<compile_context>
chip_gen: v6e
topology: v6e:2x2x1
jax: 0.10.0
libtpu: 0.0.40
codegen_flags: <defaults>
</compile_context>

<pallas_src>
import math
from functools import partial

import jax
import jax.numpy as jnp
from jax.experimental import pallas as pl
from jax.experimental.pallas import tpu as pltpu

# ----------------------------- small config -----------------------------
VOCAB = 128
HIDDEN = 32
INTER = 64
N_LAYERS = 2
N_HEADS = 4
N_KV_HEADS = 2
HEAD_DIM = 16
EPS = 1e-6
ROPE_THETA = 10000.0
BATCH = 2
SEQ = 8

Q_DIM = N_HEADS * HEAD_DIM       # 64
KV_DIM = N_KV_HEADS * HEAD_DIM   # 32


# ----------------------------- fused Pallas kernel -----------------------------
def _rmsnorm_f32(x, w, eps):
    # x: (R, H) f32, w: (1, H)
    var = jnp.mean(x * x, axis=-1, keepdims=True)
    return x * jax.lax.rsqrt(var + eps) * (1.0 + w.astype(jnp.float32))


def _gemma_kernel(x_ref, cos_ref, sin_ref, mask_ref,
                  wq_ref, wqr_ref, wk_ref, wkr_ref, wv_ref, wo_ref,
                  wg_ref, wu_ref, wd_ref,
                  ln_in_ref, ln_post_ref, ln_f_ref,
                  o_ref, *, num_layers, num_heads, num_kv_heads, head_dim, eps):
    H = x_ref.shape[-1]
    hd = head_dim
    kv_dim = num_kv_heads * hd
    n_rep = num_heads // num_kv_heads
    scale = 1.0 / math.sqrt(hd)

    # Running hidden state for the whole (B*S, H) slab, seeded with sqrt(H) scale.
    h = x_ref[...].astype(jnp.float32) * jnp.float32(math.sqrt(H))

    cos = cos_ref[...]                  # (BS, Q_DIM), head-tiled on host
    sin = sin_ref[...]
    cos_k = cos[:, :kv_dim]             # first KV_DIM lanes == kv-head tiling
    sin_k = sin[:, :kv_dim]
    mask = mask_ref[...]                # (BS, BS) block-diagonal additive mask

    dn = (((1,), (1,)), ((), ()))       # contract last dims: q @ k^T without transpose

    for l in range(num_layers):         # static unroll; all weights VMEM-resident
        # ---------------- self-attention block ----------------
        xn = _rmsnorm_f32(h, ln_in_ref[l], eps)
        # RoPE folded into weights: rotate_half(xn @ W) == xn @ (W @ R)
        q = (jnp.dot(xn, wq_ref[l], preferred_element_type=jnp.float32) * cos
             + jnp.dot(xn, wqr_ref[l], preferred_element_type=jnp.float32) * sin)
        k = (jnp.dot(xn, wk_ref[l], preferred_element_type=jnp.float32) * cos_k
             + jnp.dot(xn, wkr_ref[l], preferred_element_type=jnp.float32) * sin_k)
        v = jnp.dot(xn, wv_ref[l], preferred_element_type=jnp.float32)

        wo_l = wo_ref[l]                # (Q_DIM, H)
        attn_delta = jnp.zeros_like(h)
        for hh in range(num_heads):     # static unroll; GQA head -> kv-head mapping
            kvh = hh // n_rep
            qh = q[:, hh * hd:(hh + 1) * hd]            # (BS, hd)
            kh = k[:, kvh * hd:(kvh + 1) * hd]          # (BS, hd)
            vh = v[:, kvh * hd:(kvh + 1) * hd]          # (BS, hd)
            s = jax.lax.dot_general(qh, kh, dn,
                                    preferred_element_type=jnp.float32) * scale + mask
            s = s - jnp.max(s, axis=-1, keepdims=True)
            p = jnp.exp(s)
            p = p * pl.reciprocal(jnp.sum(p, axis=-1, keepdims=True), approx=True)
            oh = jnp.dot(p, vh, preferred_element_type=jnp.float32)
            # per-head o_proj accumulation (sublane-aligned row slice of wo)
            attn_delta = attn_delta + jnp.dot(
                oh, wo_l[hh * hd:(hh + 1) * hd, :],
                preferred_element_type=jnp.float32)
        h = h + attn_delta

        # ---------------- MLP block ----------------
        xn2 = _rmsnorm_f32(h, ln_post_ref[l], eps)
        g = jnp.dot(xn2, wg_ref[l], preferred_element_type=jnp.float32)
        u = jnp.dot(xn2, wu_ref[l], preferred_element_type=jnp.float32)
        act = jax.nn.gelu(g, approximate=True) * u      # gelu(approximate='tanh')
        h = h + jnp.dot(act, wd_ref[l], preferred_element_type=jnp.float32)

    # single final store: last-layer hidden state through the final RMSNorm
    o_ref[...] = _rmsnorm_f32(h, ln_f_ref[...], eps).astype(o_ref.dtype)


# ----------------------------- wrapper -----------------------------
def rotate_half_matrix(num_heads, head_dim, dtype=jnp.float32):
    """(x @ R) == rotate_half(x) for x packed per head along the last axis."""
    n = num_heads * head_dim
    half = head_dim // 2
    idx = jnp.arange(n)
    within = idx % head_dim
    src = jnp.where(within < half, idx + half, idx - half)
    sign = jnp.where(within < half, -1.0, 1.0).astype(dtype)
    return jnp.zeros((n, n), dtype).at[src, idx].set(sign)


def rope_tables(position_ids, head_dim, theta, dtype):
    # GemmaRotaryEmbedding: inv_freq over even dims, emb = cat(freqs, freqs)
    inv_freq = 1.0 / (theta ** (jnp.arange(0, head_dim, 2, dtype=jnp.float32) / head_dim))
    freqs = position_ids.astype(jnp.float32)[:, :, None] * inv_freq[None, None, :]
    emb = jnp.concatenate([freqs, freqs], axis=-1)      # (B, S, hd)
    return jnp.cos(emb).astype(dtype), jnp.sin(emb).astype(dtype)


def gemma_forward(params, inputs_embeds, attn_mask, cos, sin):
    B, S, H = inputs_embeds.shape
    L = len(params["layers"])
    BS = B * S

    def stack_t(name):
        return jnp.stack([params["layers"][i][name].T for i in range(L)])

    wq = stack_t("wq")      # (L, H, Q_DIM)
    wk = stack_t("wk")      # (L, H, KV_DIM)
    wv = stack_t("wv")      # (L, H, KV_DIM)
    wo = stack_t("wo")      # (L, Q_DIM, H)
    wg = stack_t("wg")      # (L, H, INTER)
    wu = stack_t("wu")      # (L, H, INTER)
    wd = stack_t("wd")      # (L, INTER, H)

    # Fold rotate_half into the q/k projection weights (host-side matmul, once).
    rot_q = rotate_half_matrix(N_HEADS, HEAD_DIM)        # (Q_DIM, Q_DIM)
    rot_k = rotate_half_matrix(N_KV_HEADS, HEAD_DIM)     # (KV_DIM, KV_DIM)
    wqr = jnp.matmul(wq, rot_q)                          # (L, H, Q_DIM)
    wkr = jnp.matmul(wk, rot_k)                          # (L, H, KV_DIM)

    ln_in = jnp.stack([params["layers"][i]["input_ln"] for i in range(L)]).reshape(L, 1, H)
    ln_post = jnp.stack([params["layers"][i]["post_ln"] for i in range(L)]).reshape(L, 1, H)
    ln_f = params["final_norm"].reshape(1, H)

    # Flat (B*S, ...) slabs.
    x_flat = inputs_embeds.reshape(BS, H)
    cos_t = jnp.tile(cos.reshape(BS, HEAD_DIM), (1, N_HEADS)).astype(jnp.float32)  # (BS, Q_DIM)
    sin_t = jnp.tile(sin.reshape(BS, HEAD_DIM), (1, N_HEADS)).astype(jnp.float32)

    # Block-diagonal additive mask: per-batch causal mask on diagonal blocks,
    # -1e9 across batches (exp -> 0), equivalent to per-batch attention.
    flat_mask = jnp.full((BS, BS), -1e9, jnp.float32)
    for b in range(B):
        flat_mask = flat_mask.at[b * S:(b + 1) * S, b * S:(b + 1) * S].set(
            attn_mask[b].astype(jnp.float32))

    vmem = pl.BlockSpec(memory_space=pltpu.MemorySpace.VMEM)
    n_inputs = 16

    out_flat = pl.pallas_call(
        partial(_gemma_kernel, num_layers=L, num_heads=N_HEADS,
                num_kv_heads=N_KV_HEADS, head_dim=HEAD_DIM, eps=EPS),
        out_shape=jax.ShapeDtypeStruct((BS, H), inputs_embeds.dtype),
        in_specs=[vmem] * n_inputs,
        out_specs=vmem,
    )(x_flat, cos_t, sin_t, flat_mask,
      wq, wqr, wk, wkr, wv, wo, wg, wu, wd, ln_in, ln_post, ln_f)

    return out_flat.reshape(B, S, H)


# ----------------------------- plain-JAX reference -----------------------------
def _ref_rmsnorm(x, w, eps=EPS):
    xf = x.astype(jnp.float32)
    var = jnp.mean(xf * xf, axis=-1, keepdims=True)
    return (xf * jax.lax.rsqrt(var + eps) * (1.0 + w.astype(jnp.float32))).astype(x.dtype)


def _ref_rotate_half(x):
    half = x.shape[-1] // 2
    return jnp.concatenate([-x[..., half:], x[..., :half]], axis=-1)


def _ref_attention(x, wq, wk, wv, wo, cos, sin, mask):
    B, S, H = x.shape
    q = (x @ wq.T).reshape(B, S, N_HEADS, HEAD_DIM).transpose(0, 2, 1, 3)
    k = (x @ wk.T).reshape(B, S, N_KV_HEADS, HEAD_DIM).transpose(0, 2, 1, 3)
    v = (x @ wv.T).reshape(B, S, N_KV_HEADS, HEAD_DIM).transpose(0, 2, 1, 3)
    c, s = cos[:, None], sin[:, None]
    q = q * c + _ref_rotate_half(q) * s
    k = k * c + _ref_rotate_half(k) * s
    n_rep = N_HEADS // N_KV_HEADS
    k = jnp.repeat(k, n_rep, axis=1)
    v = jnp.repeat(v, n_rep, axis=1)
    a = jnp.einsum("bhqd,bhkd->bhqk", q, k) / math.sqrt(HEAD_DIM) + mask[:, None]
    a = jax.nn.softmax(a, axis=-1)
    o = jnp.einsum("bhqk,bhkd->bhqd", a, v)
    o = o.transpose(0, 2, 1, 3).reshape(B, S, N_HEADS * HEAD_DIM)
    return o @ wo.T


def ref_forward(params, inputs_embeds, attn_mask, cos, sin):
    B, S, H = inputs_embeds.shape
    h = inputs_embeds * math.sqrt(H)
    for layer in params["layers"]:
        xn = _ref_rmsnorm(h, layer["input_ln"])
        h = h + _ref_attention(xn, layer["wq"], layer["wk"], layer["wv"],
                               layer["wo"], cos, sin, attn_mask)
        xn = _ref_rmsnorm(h, layer["post_ln"])
        g = xn @ layer["wg"].T
        u = xn @ layer["wu"].T
        h = h + (jax.nn.gelu(g, approximate=True) * u) @ layer["wd"].T
    return _ref_rmsnorm(h, params["final_norm"])


# ----------------------------- parameter init -----------------------------
def init_params(key):
    def lin(k, out_f, in_f):
        return 0.05 * jax.random.normal(k, (out_f, in_f), jnp.float32)

    layers = []
    for _ in range(N_LAYERS):
        key, *ks = jax.random.split(key, 10)
        layers.append(dict(
            wq=lin(ks[0], N_HEADS * HEAD_DIM, HIDDEN),
            wk=lin(ks[1], N_KV_HEADS * HEAD_DIM, HIDDEN),
            wv=lin(ks[2], N_KV_HEADS * HEAD_DIM, HIDDEN),
            wo=lin(ks[3], HIDDEN, N_HEADS * HEAD_DIM),
            wg=lin(ks[4], INTER, HIDDEN),
            wu=lin(ks[5], INTER, HIDDEN),
            wd=lin(ks[6], HIDDEN, INTER),
            input_ln=0.1 * jax.random.normal(ks[7], (HIDDEN,), jnp.float32),
            post_ln=0.1 * jax.random.normal(ks[8], (HIDDEN,), jnp.float32),
        ))
    key, kf = jax.random.split(key)
    return dict(layers=layers,
                final_norm=0.1 * jax.random.normal(kf, (HIDDEN,), jnp.float32))


# ----------------------------- main -----------------------------
if __name__ == "__main__":
    key = jax.random.PRNGKey(0)
    key, k_emb = jax.random.split(key)
    params = init_params(key)

    inputs_embeds = jax.random.normal(k_emb, (BATCH, SEQ, HIDDEN), jnp.float32)
    position_ids = jnp.broadcast_to(jnp.arange(SEQ)[None, :], (BATCH, SEQ))
    cos, sin = rope_tables(position_ids, HEAD_DIM, ROPE_THETA, jnp.float32)

    # causal additive mask, (B, S, S): 0 where allowed, large negative otherwise
    causal = jnp.tril(jnp.ones((SEQ, SEQ), bool))
    attn_mask = jnp.where(causal, 0.0, -1e9).astype(jnp.float32)
    attn_mask = jnp.broadcast_to(attn_mask, (BATCH, SEQ, SEQ))

    out = jax.jit(gemma_forward)(params, inputs_embeds, attn_mask, cos, sin)
    out = jax.block_until_ready(out)

    ref = ref_forward(params, inputs_embeds, attn_mask, cos, sin)
    assert out.shape == (BATCH, SEQ, HIDDEN)
    assert jnp.allclose(out, ref, rtol=2e-3, atol=2e-3), "mismatch vs JAX reference"

    print("KERNEL_OK")
</pallas_src>

<mosaic_0001>
module attributes {stable_mosaic.version = 11 : i64} {
  func.func @_gemma_kernel(%arg0: memref<16x32xf32, #tpu.memory_space<vmem>>, %arg1: memref<16x64xf32, #tpu.memory_space<vmem>>, %arg2: memref<16x64xf32, #tpu.memory_space<vmem>>, %arg3: memref<16x16xf32, #tpu.memory_space<vmem>>, %arg4: memref<2x32x64xf32, #tpu.memory_space<vmem>>, %arg5: memref<2x32x64xf32, #tpu.memory_space<vmem>>, %arg6: memref<2x32x32xf32, #tpu.memory_space<vmem>>, %arg7: memref<2x32x32xf32, #tpu.memory_space<vmem>>, %arg8: memref<2x32x32xf32, #tpu.memory_space<vmem>>, %arg9: memref<2x64x32xf32, #tpu.memory_space<vmem>>, %arg10: memref<2x32x64xf32, #tpu.memory_space<vmem>>, %arg11: memref<2x32x64xf32, #tpu.memory_space<vmem>>, %arg12: memref<2x64x32xf32, #tpu.memory_space<vmem>>, %arg13: memref<2x1x32xf32, #tpu.memory_space<vmem>>, %arg14: memref<2x1x32xf32, #tpu.memory_space<vmem>>, %arg15: memref<1x32xf32, #tpu.memory_space<vmem>>, %arg16: memref<16x32xf32, #tpu.memory_space<vmem>>) attributes {dimension_semantics = [], scalar_prefetch = 0 : i64, scratch_operands = 0 : i64, tpu.core_type = #tpu.core_type<tc>} {
    %c0 = arith.constant 0 : index
    %c0_0 = arith.constant 0 : index
    %0 = vector.load %arg0[%c0, %c0_0] : memref<16x32xf32, #tpu.memory_space<vmem>>, vector<16x32xf32>
    %cst = arith.constant 5.65685415 : f32
    %1 = vector.broadcast %cst : f32 to vector<16x32xf32>
    %2 = arith.mulf %0, %1 : vector<16x32xf32>
    %c0_1 = arith.constant 0 : index
    %c0_2 = arith.constant 0 : index
    %3 = vector.load %arg1[%c0_1, %c0_2] : memref<16x64xf32, #tpu.memory_space<vmem>>, vector<16x64xf32>
    %c0_3 = arith.constant 0 : index
    %c0_4 = arith.constant 0 : index
    %4 = vector.load %arg2[%c0_3, %c0_4] : memref<16x64xf32, #tpu.memory_space<vmem>>, vector<16x64xf32>
    %5 = vector.extract_strided_slice %3 {offsets = [0, 0], sizes = [16, 32], strides = [1, 1]} : vector<16x64xf32> to vector<16x32xf32>
    %6 = vector.extract_strided_slice %4 {offsets = [0, 0], sizes = [16, 32], strides = [1, 1]} : vector<16x64xf32> to vector<16x32xf32>
    %c0_5 = arith.constant 0 : index
    %c0_6 = arith.constant 0 : index
    %7 = vector.load %arg3[%c0_5, %c0_6] : memref<16x16xf32, #tpu.memory_space<vmem>>, vector<16x16xf32>
    %c0_7 = arith.constant 0 : index
    %c0_8 = arith.constant 0 : index
    %c0_9 = arith.constant 0 : index
    %8 = vector.load %arg13[%c0_7, %c0_8, %c0_9] : memref<2x1x32xf32, #tpu.memory_space<vmem>>, vector<1x1x32xf32>
    %9 = vector.shape_cast %8 : vector<1x1x32xf32> to vector<1x32xf32>
    %10 = arith.mulf %2, %2 : vector<16x32xf32>
    %cst_10 = arith.constant dense<0.000000e+00> : vector<16xf32>
    %11 = vector.multi_reduction <add>, %10, %cst_10 [1] : vector<16x32xf32> to vector<16xf32>
    %12 = vector.shape_cast %11 : vector<16xf32> to vector<16x1xf32>
    %cst_11 = arith.constant 3.200000e+01 : f32
    %13 = vector.broadcast %cst_11 : f32 to vector<16x1xf32>
    %14 = arith.divf %12, %13 : vector<16x1xf32>
    %cst_12 = arith.constant 9.99999997E-7 : f32
    %15 = vector.broadcast %cst_12 : f32 to vector<16x1xf32>
    %16 = arith.addf %14, %15 : vector<16x1xf32>
    %17 = math.rsqrt %16 : vector<16x1xf32>
    %18 = vector.broadcast %17 : vector<16x1xf32> to vector<16x32xf32>
    %19 = arith.mulf %2, %18 : vector<16x32xf32>
    %cst_13 = arith.constant 1.000000e+00 : f32
    %20 = vector.broadcast %cst_13 : f32 to vector<1x32xf32>
    %21 = arith.addf %20, %9 : vector<1x32xf32>
    %22 = vector.broadcast %21 : vector<1x32xf32> to vector<16x32xf32>
    %23 = arith.mulf %19, %22 : vector<16x32xf32>
    %c0_14 = arith.constant 0 : index
    %c0_15 = arith.constant 0 : index
    %c0_16 = arith.constant 0 : index
    %24 = vector.load %arg4[%c0_14, %c0_15, %c0_16] : memref<2x32x64xf32, #tpu.memory_space<vmem>>, vector<1x32x64xf32>
    %25 = vector.shape_cast %24 : vector<1x32x64xf32> to vector<32x64xf32>
    %cst_17 = arith.constant dense<0.000000e+00> : vector<16x64xf32>
    %26 = tpu.matmul %23, %25, %cst_17 {dimension_numbers = #tpu.dot_dimension_numbers<[1], [0], [0], [1], [0, 0, 1, 1], [], []>} : vector<16x32xf32>, vector<32x64xf32>, vector<16x64xf32> -> vector<16x64xf32>
    %27 = arith.mulf %26, %3 : vector<16x64xf32>
    %c0_18 = arith.constant 0 : index
    %c0_19 = arith.constant 0 : index
    %c0_20 = arith.constant 0 : index
    %28 = vector.load %arg5[%c0_18, %c0_19, %c0_20] : memref<2x32x64xf32, #tpu.memory_space<vmem>>, vector<1x32x64xf32>
    %29 = vector.shape_cast %28 : vector<1x32x64xf32> to vector<32x64xf32>
    %cst_21 = arith.constant dense<0.000000e+00> : vector<16x64xf32>
    %30 = tpu.matmul %23, %29, %cst_21 {dimension_numbers = #tpu.dot_dimension_numbers<[1], [0], [0], [1], [0, 0, 1, 1], [], []>} : vector<16x32xf32>, vector<32x64xf32>, vector<16x64xf32> -> vector<16x64xf32>
    %31 = arith.mulf %30, %4 : vector<16x64xf32>
    %32 = arith.addf %27, %31 : vector<16x64xf32>
    %c0_22 = arith.constant 0 : index
    %c0_23 = arith.constant 0 : index
    %c0_24 = arith.constant 0 : index
    %33 = vector.load %arg6[%c0_22, %c0_23, %c0_24] : memref<2x32x32xf32, #tpu.memory_space<vmem>>, vector<1x32x32xf32>
    %34 = vector.shape_cast %33 : vector<1x32x32xf32> to vector<32x32xf32>
    %cst_25 = arith.constant dense<0.000000e+00> : vector<16x32xf32>
    %35 = tpu.matmul %23, %34, %cst_25 {dimension_numbers = #tpu.dot_dimension_numbers<[1], [0], [0], [1], [0, 0, 1, 1], [], []>} : vector<16x32xf32>, vector<32x32xf32>, vector<16x32xf32> -> vector<16x32xf32>
    %36 = arith.mulf %35, %5 : vector<16x32xf32>
    %c0_26 = arith.constant 0 : index
    %c0_27 = arith.constant 0 : index
    %c0_28 = arith.constant 0 : index
    %37 = vector.load %arg7[%c0_26, %c0_27, %c0_28] : memref<2x32x32xf32, #tpu.memory_space<vmem>>, vector<1x32x32xf32>
    %38 = vector.shape_cast %37 : vector<1x32x32xf32> to vector<32x32xf32>
    %cst_29 = arith.constant dense<0.000000e+00> : vector<16x32xf32>
    %39 = tpu.matmul %23, %38, %cst_29 {dimension_numbers = #tpu.dot_dimension_numbers<[1], [0], [0], [1], [0, 0, 1, 1], [], []>} : vector<16x32xf32>, vector<32x32xf32>, vector<16x32xf32> -> vector<16x32xf32>
    %40 = arith.mulf %39, %6 : vector<16x32xf32>
    %41 = arith.addf %36, %40 : vector<16x32xf32>
    %c0_30 = arith.constant 0 : index
    %c0_31 = arith.constant 0 : index
    %c0_32 = arith.constant 0 : index
    %42 = vector.load %arg8[%c0_30, %c0_31, %c0_32] : memref<2x32x32xf32, #tpu.memory_space<vmem>>, vector<1x32x32xf32>
    %43 = vector.shape_cast %42 : vector<1x32x32xf32> to vector<32x32xf32>
    %cst_33 = arith.constant dense<0.000000e+00> : vector<16x32xf32>
    %44 = tpu.matmul %23, %43, %cst_33 {dimension_numbers = #tpu.dot_dimension_numbers<[1], [0], [0], [1], [0, 0, 1, 1], [], []>} : vector<16x32xf32>, vector<32x32xf32>, vector<16x32xf32> -> vector<16x32xf32>
    %c0_34 = arith.constant 0 : index
    %c0_35 = arith.constant 0 : index
    %c0_36 = arith.constant 0 : index
    %45 = vector.load %arg9[%c0_34, %c0_35, %c0_36] : memref<2x64x32xf32, #tpu.memory_space<vmem>>, vector<1x64x32xf32>
    %46 = vector.shape_cast %45 : vector<1x64x32xf32> to vector<64x32xf32>
    %cst_37 = arith.constant 0.000000e+00 : f32
    %47 = vector.broadcast %cst_37 : f32 to vector<16x32xf32>
    %48 = vector.extract_strided_slice %32 {offsets = [0, 0], sizes = [16, 16], strides = [1, 1]} : vector<16x64xf32> to vector<16x16xf32>
    %49 = vector.extract_strided_slice %41 {offsets = [0, 0], sizes = [16, 16], strides = [1, 1]} : vector<16x32xf32> to vector<16x16xf32>
    %50 = vector.extract_strided_slice %44 {offsets = [0, 0], sizes = [16, 16], strides = [1, 1]} : vector<16x32xf32> to vector<16x16xf32>
    %cst_38 = arith.constant dense<0.000000e+00> : vector<16x16xf32>
    %51 = tpu.matmul %48, %49, %cst_38 {dimension_numbers = #tpu.dot_dimension_numbers<[1], [1], [0], [0], [0, 0, 1, 0], [], []>} : vector<16x16xf32>, vector<16x16xf32>, vector<16x16xf32> -> vector<16x16xf32>
    %cst_39 = arith.constant 2.500000e-01 : f32
    %52 = vector.broadcast %cst_39 : f32 to vector<16x16xf32>
    %53 = arith.mulf %51, %52 : vector<16x16xf32>
    %54 = arith.addf %53, %7 : vector<16x16xf32>
    %cst_40 = arith.constant dense<0xFF800000> : vector<16xf32>
    %55 = vector.multi_reduction <maximumf>, %54, %cst_40 [1] : vector<16x16xf32> to vector<16xf32>
    %56 = vector.shape_cast %55 : vector<16xf32> to vector<16x1xf32>
    %57 = vector.broadcast %56 : vector<16x1xf32> to vector<16x16xf32>
    %58 = arith.subf %54, %57 : vector<16x16xf32>
    %59 = math.exp %58 : vector<16x16xf32>
    %cst_41 = arith.constant dense<0.000000e+00> : vector<16xf32>
    %60 = vector.multi_reduction <add>, %59, %cst_41 [1] : vector<16x16xf32> to vector<16xf32>
    %61 = vector.shape_cast %60 : vector<16xf32> to vector<16x1xf32>
    %62 = tpu.reciprocal %61 {approx = true} : vector<16x1xf32> -> vector<16x1xf32>
    %63 = vector.broadcast %62 : vector<16x1xf32> to vector<16x16xf32>
    %64 = arith.mulf %59, %63 : vector<16x16xf32>
    %cst_42 = arith.constant dense<0.000000e+00> : vector<16x16xf32>
    %65 = tpu.matmul %64, %50, %cst_42 {dimension_numbers = #tpu.dot_dimension_numbers<[1], [0], [0], [1], [0, 0, 1, 1], [], []>} : vector<16x16xf32>, vector<16x16xf32>, vector<16x16xf32> -> vector<16x16xf32>
    %66 = vector.extract_strided_slice %46 {offsets = [0, 0], sizes = [16, 32], strides = [1, 1]} : vector<64x32xf32> to vector<16x32xf32>
    %cst_43 = arith.constant dense<0.000000e+00> : vector<16x32xf32>
    %67 = tpu.matmul %65, %66, %cst_43 {dimension_numbers = #tpu.dot_dimension_numbers<[1], [0], [0], [1], [0, 0, 1, 1], [], []>} : vector<16x16xf32>, vector<16x32xf32>, vector<16x32xf32> -> vector<16x32xf32>
    %68 = arith.addf %47, %67 : vector<16x32xf32>
    %69 = vector.extract_strided_slice %32 {offsets = [0, 16], sizes = [16, 16], strides = [1, 1]} : vector<16x64xf32> to vector<16x16xf32>
    %70 = vector.extract_strided_slice %41 {offsets = [0, 0], sizes = [16, 16], strides = [1, 1]} : vector<16x32xf32> to vector<16x16xf32>
    %71 = vector.extract_strided_slice %44 {offsets = [0, 0], sizes = [16, 16], strides = [1, 1]} : vector<16x32xf32> to vector<16x16xf32>
    %cst_44 = arith.constant dense<0.000000e+00> : vector<16x16xf32>
    %72 = tpu.matmul %69, %70, %cst_44 {dimension_numbers = #tpu.dot_dimension_numbers<[1], [1], [0], [0], [0, 0, 1, 0], [], []>} : vector<16x16xf32>, vector<16x16xf32>, vector<16x16xf32> -> vector<16x16xf32>
    %cst_45 = arith.constant 2.500000e-01 : f32
    %73 = vector.broadcast %cst_45 : f32 to vector<16x16xf32>
    %74 = arith.mulf %72, %73 : vector<16x16xf32>
    %75 = arith.addf %74, %7 : vector<16x16xf32>
    %cst_46 = arith.constant dense<0xFF800000> : vector<16xf32>
    %76 = vector.multi_reduction <maximumf>, %75, %cst_46 [1] : vector<16x16xf32> to vector<16xf32>
    %77 = vector.shape_cast %76 : vector<16xf32> to vector<16x1xf32>
    %78 = vector.broadcast %77 : vector<16x1xf32> to vector<16x16xf32>
    %79 = arith.subf %75, %78 : vector<16x16xf32>
    %80 = math.exp %79 : vector<16x16xf32>
    %cst_47 = arith.constant dense<0.000000e+00> : vector<16xf32>
    %81 = vector.multi_reduction <add>, %80, %cst_47 [1] : vector<16x16xf32> to vector<16xf32>
    %82 = vector.shape_cast %81 : vector<16xf32> to vector<16x1xf32>
    %83 = tpu.reciprocal %82 {approx = true} : vector<16x1xf32> -> vector<16x1xf32>
    %84 = vector.broadcast %83 : vector<16x1xf32> to vector<16x16xf32>
    %85 = arith.mulf %80, %84 : vector<16x16xf32>
    %cst_48 = arith.constant dense<0.000000e+00> : vector<16x16xf32>
    %86 = tpu.matmul %85, %71, %cst_48 {dimension_numbers = #tpu.dot_dimension_numbers<[1], [0], [0], [1], [0, 0, 1, 1], [], []>} : vector<16x16xf32>, vector<16x16xf32>, vector<16x16xf32> -> vector<16x16xf32>
    %87 = vector.extract_strided_slice %46 {offsets = [16, 0], sizes = [16, 32], strides = [1, 1]} : vector<64x32xf32> to vector<16x32xf32>
    %cst_49 = arith.constant dense<0.000000e+00> : vector<16x32xf32>
    %88 = tpu.matmul %86, %87, %cst_49 {dimension_numbers = #tpu.dot_dimension_numbers<[1], [0], [0], [1], [0, 0, 1, 1], [], []>} : vector<16x16xf32>, vector<16x32xf32>, vector<16x32xf32> -> vector<16x32xf32>
    %89 = arith.addf %68, %88 : vector<16x32xf32>
    %90 = vector.extract_strided_slice %32 {offsets = [0, 32], sizes = [16, 16], strides = [1, 1]} : vector<16x64xf32> to vector<16x16xf32>
    %91 = vector.extract_strided_slice %41 {offsets = [0, 16], sizes = [16, 16], strides = [1, 1]} : vector<16x32xf32> to vector<16x16xf32>
    %92 = vector.extract_strided_slice %44 {offsets = [0, 16], sizes = [16, 16], strides = [1, 1]} : vector<16x32xf32> to vector<16x16xf32>
    %cst_50 = arith.constant dense<0.000000e+00> : vector<16x16xf32>
    %93 = tpu.matmul %90, %91, %cst_50 {dimension_numbers = #tpu.dot_dimension_numbers<[1], [1], [0], [0], [0, 0, 1, 0], [], []>} : vector<16x16xf32>, vector<16x16xf32>, vector<16x16xf32> -> vector<16x16xf32>
    %cst_51 = arith.constant 2.500000e-01 : f32
    %94 = vector.broadcast %cst_51 : f32 to vector<16x16xf32>
    %95 = arith.mulf %93, %94 : vector<16x16xf32>
    %96 = arith.addf %95, %7 : vector<16x16xf32>
    %cst_52 = arith.constant dense<0xFF800000> : vector<16xf32>
    %97 = vector.multi_reduction <maximumf>, %96, %cst_52 [1] : vector<16x16xf32> to vector<16xf32>
    %98 = vector.shape_cast %97 : vector<16xf32> to vector<16x1xf32>
    %99 = vector.broadcast %98 : vector<16x1xf32> to vector<16x16xf32>
    %100 = arith.subf %96, %99 : vector<16x16xf32>
    %101 = math.exp %100 : vector<16x16xf32>
    %cst_53 = arith.constant dense<0.000000e+00> : vector<16xf32>
    %102 = vector.multi_reduction <add>, %101, %cst_53 [1] : vector<16x16xf32> to vector<16xf32>
    %103 = vector.shape_cast %102 : vector<16xf32> to vector<16x1xf32>
    %104 = tpu.reciprocal %103 {approx = true} : vector<16x1xf32> -> vector<16x1xf32>
    %105 = vector.broadcast %104 : vector<16x1xf32> to vector<16x16xf32>
    %106 = arith.mulf %101, %105 : vector<16x16xf32>
    %cst_54 = arith.constant dense<0.000000e+00> : vector<16x16xf32>
    %107 = tpu.matmul %106, %92, %cst_54 {dimension_numbers = #tpu.dot_dimension_numbers<[1], [0], [0], [1], [0, 0, 1, 1], [], []>} : vector<16x16xf32>, vector<16x16xf32>, vector<16x16xf32> -> vector<16x16xf32>
    %108 = vector.extract_strided_slice %46 {offsets = [32, 0], sizes = [16, 32], strides = [1, 1]} : vector<64x32xf32> to vector<16x32xf32>
    %cst_55 = arith.constant dense<0.000000e+00> : vector<16x32xf32>
    %109 = tpu.matmul %107, %108, %cst_55 {dimension_numbers = #tpu.dot_dimension_numbers<[1], [0], [0], [1], [0, 0, 1, 1], [], []>} : vector<16x16xf32>, vector<16x32xf32>, vector<16x32xf32> -> vector<16x32xf32>
    %110 = arith.addf %89, %109 : vector<16x32xf32>
    %111 = vector.extract_strided_slice %32 {offsets = [0, 48], sizes = [16, 16], strides = [1, 1]} : vector<16x64xf32> to vector<16x16xf32>
    %112 = vector.extract_strided_slice %41 {offsets = [0, 16], sizes = [16, 16], strides = [1, 1]} : vector<16x32xf32> to vector<16x16xf32>
    %113 = vector.extract_strided_slice %44 {offsets = [0, 16], sizes = [16, 16], strides = [1, 1]} : vector<16x32xf32> to vector<16x16xf32>
    %cst_56 = arith.constant dense<0.000000e+00> : vector<16x16xf32>
    %114 = tpu.matmul %111, %112, %cst_56 {dimension_numbers = #tpu.dot_dimension_numbers<[1], [1], [0], [0], [0, 0, 1, 0], [], []>} : vector<16x16xf32>, vector<16x16xf32>, vector<16x16xf32> -> vector<16x16xf32>
    %cst_57 = arith.constant 2.500000e-01 : f32
    %115 = vector.broadcast %cst_57 : f32 to vector<16x16xf32>
    %116 = arith.mulf %114, %115 : vector<16x16xf32>
    %117 = arith.addf %116, %7 : vector<16x16xf32>
    %cst_58 = arith.constant dense<0xFF800000> : vector<16xf32>
    %118 = vector.multi_reduction <maximumf>, %117, %cst_58 [1] : vector<16x16xf32> to vector<16xf32>
    %119 = vector.shape_cast %118 : vector<16xf32> to vector<16x1xf32>
    %120 = vector.broadcast %119 : vector<16x1xf32> to vector<16x16xf32>
    %121 = arith.subf %117, %120 : vector<16x16xf32>
    %122 = math.exp %121 : vector<16x16xf32>
    %cst_59 = arith.constant dense<0.000000e+00> : vector<16xf32>
    %123 = vector.multi_reduction <add>, %122, %cst_59 [1] : vector<16x16xf32> to vector<16xf32>
    %124 = vector.shape_cast %123 : vector<16xf32> to vector<16x1xf32>
    %125 = tpu.reciprocal %124 {approx = true} : vector<16x1xf32> -> vector<16x1xf32>
    %126 = vector.broadcast %125 : vector<16x1xf32> to vector<16x16xf32>
    %127 = arith.mulf %122, %126 : vector<16x16xf32>
    %cst_60 = arith.constant dense<0.000000e+00> : vector<16x16xf32>
    %128 = tpu.matmul %127, %113, %cst_60 {dimension_numbers = #tpu.dot_dimension_numbers<[1], [0], [0], [1], [0, 0, 1, 1], [], []>} : vector<16x16xf32>, vector<16x16xf32>, vector<16x16xf32> -> vector<16x16xf32>
    %129 = vector.extract_strided_slice %46 {offsets = [48, 0], sizes = [16, 32], strides = [1, 1]} : vector<64x32xf32> to vector<16x32xf32>
    %cst_61 = arith.constant dense<0.000000e+00> : vector<16x32xf32>
    %130 = tpu.matmul %128, %129, %cst_61 {dimension_numbers = #tpu.dot_dimension_numbers<[1], [0], [0], [1], [0, 0, 1, 1], [], []>} : vector<16x16xf32>, vector<16x32xf32>, vector<16x32xf32> -> vector<16x32xf32>
    %131 = arith.addf %110, %130 : vector<16x32xf32>
    %132 = arith.addf %2, %131 : vector<16x32xf32>
    %c0_62 = arith.constant 0 : index
    %c0_63 = arith.constant 0 : index
    %c0_64 = arith.constant 0 : index
    %133 = vector.load %arg14[%c0_62, %c0_63, %c0_64] : memref<2x1x32xf32, #tpu.memory_space<vmem>>, vector<1x1x32xf32>
    %134 = vector.shape_cast %133 : vector<1x1x32xf32> to vector<1x32xf32>
    %135 = arith.mulf %132, %132 : vector<16x32xf32>
    %cst_65 = arith.constant dense<0.000000e+00> : vector<16xf32>
    %136 = vector.multi_reduction <add>, %135, %cst_65 [1] : vector<16x32xf32> to vector<16xf32>
    %137 = vector.shape_cast %136 : vector<16xf32> to vector<16x1xf32>
    %cst_66 = arith.constant 3.200000e+01 : f32
    %138 = vector.broadcast %cst_66 : f32 to vector<16x1xf32>
    %139 = arith.divf %137, %138 : vector<16x1xf32>
    %cst_67 = arith.constant 9.99999997E-7 : f32
    %140 = vector.broadcast %cst_67 : f32 to vector<16x1xf32>
    %141 = arith.addf %139, %140 : vector<16x1xf32>
    %142 = math.rsqrt %141 : vector<16x1xf32>
    %143 = vector.broadcast %142 : vector<16x1xf32> to vector<16x32xf32>
    %144 = arith.mulf %132, %143 : vector<16x32xf32>
    %cst_68 = arith.constant 1.000000e+00 : f32
    %145 = vector.broadcast %cst_68 : f32 to vector<1x32xf32>
    %146 = arith.addf %145, %134 : vector<1x32xf32>
    %147 = vector.broadcast %146 : vector<1x32xf32> to vector<16x32xf32>
    %148 = arith.mulf %144, %147 : vector<16x32xf32>
    %c0_69 = arith.constant 0 : index
    %c0_70 = arith.constant 0 : index
    %c0_71 = arith.constant 0 : index
    %149 = vector.load %arg10[%c0_69, %c0_70, %c0_71] : memref<2x32x64xf32, #tpu.memory_space<vmem>>, vector<1x32x64xf32>
    %150 = vector.shape_cast %149 : vector<1x32x64xf32> to vector<32x64xf32>
    %cst_72 = arith.constant dense<0.000000e+00> : vector<16x64xf32>
    %151 = tpu.matmul %148, %150, %cst_72 {dimension_numbers = #tpu.dot_dimension_numbers<[1], [0], [0], [1], [0, 0, 1, 1], [], []>} : vector<16x32xf32>, vector<32x64xf32>, vector<16x64xf32> -> vector<16x64xf32>
    %c0_73 = arith.constant 0 : index
    %c0_74 = arith.constant 0 : index
    %c0_75 = arith.constant 0 : index
    %152 = vector.load %arg11[%c0_73, %c0_74, %c0_75] : memref<2x32x64xf32, #tpu.memory_space<vmem>>, vector<1x32x64xf32>
    %153 = vector.shape_cast %152 : vector<1x32x64xf32> to vector<32x64xf32>
    %cst_76 = arith.constant dense<0.000000e+00> : vector<16x64xf32>
    %154 = tpu.matmul %148, %153, %cst_76 {dimension_numbers = #tpu.dot_dimension_numbers<[1], [0], [0], [1], [0, 0, 1, 1], [], []>} : vector<16x32xf32>, vector<32x64xf32>, vector<16x64xf32> -> vector<16x64xf32>
    %155 = arith.mulf %151, %151 : vector<16x64xf32>
    %156 = arith.mulf %151, %155 : vector<16x64xf32>
    %cst_77 = arith.constant 4.471500e-02 : f32
    %157 = vector.broadcast %cst_77 : f32 to vector<16x64xf32>
    %158 = arith.mulf %157, %156 : vector<16x64xf32>
    %159 = arith.addf %151, %158 : vector<16x64xf32>
    %cst_78 = arith.constant 0.797884583 : f32
    %160 = vector.broadcast %cst_78 : f32 to vector<16x64xf32>
    %161 = arith.mulf %160, %159 : vector<16x64xf32>
    %162 = math.tanh %161 : vector<16x64xf32>
    %cst_79 = arith.constant 1.000000e+00 : f32
    %163 = vector.broadcast %cst_79 : f32 to vector<16x64xf32>
    %164 = arith.addf %163, %162 : vector<16x64xf32>
    %cst_80 = arith.constant 5.000000e-01 : f32
    %165 = vector.broadcast %cst_80 : f32 to vector<16x64xf32>
    %166 = arith.mulf %165, %164 : vector<16x64xf32>
    %167 = arith.mulf %151, %166 : vector<16x64xf32>
    %168 = arith.mulf %167, %154 : vector<16x64xf32>
    %c0_81 = arith.constant 0 : index
    %c0_82 = arith.constant 0 : index
    %c0_83 = arith.constant 0 : index
    %169 = vector.load %arg12[%c0_81, %c0_82, %c0_83] : memref<2x64x32xf32, #tpu.memory_space<vmem>>, vector<1x64x32xf32>
    %170 = vector.shape_cast %169 : vector<1x64x32xf32> to vector<64x32xf32>
    %cst_84 = arith.constant dense<0.000000e+00> : vector<16x32xf32>
    %171 = tpu.matmul %168, %170, %cst_84 {dimension_numbers = #tpu.dot_dimension_numbers<[1], [0], [0], [1], [0, 0, 1, 1], [], []>} : vector<16x64xf32>, vector<64x32xf32>, vector<16x32xf32> -> vector<16x32xf32>
    %172 = arith.addf %132, %171 : vector<16x32xf32>
    %c1 = arith.constant 1 : index
    %c0_85 = arith.constant 0 : index
    %c0_86 = arith.constant 0 : index
    %173 = vector.load %arg13[%c1, %c0_85, %c0_86] : memref<2x1x32xf32, #tpu.memory_space<vmem>>, vector<1x1x32xf32>
    %174 = vector.shape_cast %173 : vector<1x1x32xf32> to vector<1x32xf32>
    %175 = arith.mulf %172, %172 : vector<16x32xf32>
    %cst_87 = arith.constant dense<0.000000e+00> : vector<16xf32>
    %176 = vector.multi_reduction <add>, %175, %cst_87 [1] : vector<16x32xf32> to vector<16xf32>
    %177 = vector.shape_cast %176 : vector<16xf32> to vector<16x1xf32>
    %cst_88 = arith.constant 3.200000e+01 : f32
    %178 = vector.broadcast %cst_88 : f32 to vector<16x1xf32>
    %179 = arith.divf %177, %178 : vector<16x1xf32>
    %cst_89 = arith.constant 9.99999997E-7 : f32
    %180 = vector.broadcast %cst_89 : f32 to vector<16x1xf32>
    %181 = arith.addf %179, %180 : vector<16x1xf32>
    %182 = math.rsqrt %181 : vector<16x1xf32>
    %183 = vector.broadcast %182 : vector<16x1xf32> to vector<16x32xf32>
    %184 = arith.mulf %172, %183 : vector<16x32xf32>
    %cst_90 = arith.constant 1.000000e+00 : f32
    %185 = vector.broadcast %cst_90 : f32 to vector<1x32xf32>
    %186 = arith.addf %185, %174 : vector<1x32xf32>
    %187 = vector.broadcast %186 : vector<1x32xf32> to vector<16x32xf32>
    %188 = arith.mulf %184, %187 : vector<16x32xf32>
    %c1_91 = arith.constant 1 : index
    %c0_92 = arith.constant 0 : index
    %c0_93 = arith.constant 0 : index
    %189 = vector.load %arg4[%c1_91, %c0_92, %c0_93] : memref<2x32x64xf32, #tpu.memory_space<vmem>>, vector<1x32x64xf32>
    %190 = vector.shape_cast %189 : vector<1x32x64xf32> to vector<32x64xf32>
    %cst_94 = arith.constant dense<0.000000e+00> : vector<16x64xf32>
    %191 = tpu.matmul %188, %190, %cst_94 {dimension_numbers = #tpu.dot_dimension_numbers<[1], [0], [0], [1], [0, 0, 1, 1], [], []>} : vector<16x32xf32>, vector<32x64xf32>, vector<16x64xf32> -> vector<16x64xf32>
    %192 = arith.mulf %191, %3 : vector<16x64xf32>
    %c1_95 = arith.constant 1 : index
    %c0_96 = arith.constant 0 : index
    %c0_97 = arith.constant 0 : index
    %193 = vector.load %arg5[%c1_95, %c0_96, %c0_97] : memref<2x32x64xf32, #tpu.memory_space<vmem>>, vector<1x32x64xf32>
    %194 = vector.shape_cast %193 : vector<1x32x64xf32> to vector<32x64xf32>
    %cst_98 = arith.constant dense<0.000000e+00> : vector<16x64xf32>
    %195 = tpu.matmul %188, %194, %cst_98 {dimension_numbers = #tpu.dot_dimension_numbers<[1], [0], [0], [1], [0, 0, 1, 1], [], []>} : vector<16x32xf32>, vector<32x64xf32>, vector<16x64xf32> -> vector<16x64xf32>
    %196 = arith.mulf %195, %4 : vector<16x64xf32>
    %197 = arith.addf %192, %196 : vector<16x64xf32>
    %c1_99 = arith.constant 1 : index
    %c0_100 = arith.constant 0 : index
    %c0_101 = arith.constant 0 : index
    %198 = vector.load %arg6[%c1_99, %c0_100, %c0_101] : memref<2x32x32xf32, #tpu.memory_space<vmem>>, vector<1x32x32xf32>
    %199 = vector.shape_cast %198 : vector<1x32x32xf32> to vector<32x32xf32>
    %cst_102 = arith.constant dense<0.000000e+00> : vector<16x32xf32>
    %200 = tpu.matmul %188, %199, %cst_102 {dimension_numbers = #tpu.dot_dimension_numbers<[1], [0], [0], [1], [0, 0, 1, 1], [], []>} : vector<16x32xf32>, vector<32x32xf32>, vector<16x32xf32> -> vector<16x32xf32>
    %201 = arith.mulf %200, %5 : vector<16x32xf32>
    %c1_103 = arith.constant 1 : index
    %c0_104 = arith.constant 0 : index
    %c0_105 = arith.constant 0 : index
    %202 = vector.load %arg7[%c1_103, %c0_104, %c0_105] : memref<2x32x32xf32, #tpu.memory_space<vmem>>, vector<1x32x32xf32>
    %203 = vector.shape_cast %202 : vector<1x32x32xf32> to vector<32x32xf32>
    %cst_106 = arith.constant dense<0.000000e+00> : vector<16x32xf32>
    %204 = tpu.matmul %188, %203, %cst_106 {dimension_numbers = #tpu.dot_dimension_numbers<[1], [0], [0], [1], [0, 0, 1, 1], [], []>} : vector<16x32xf32>, vector<32x32xf32>, vector<16x32xf32> -> vector<16x32xf32>
    %205 = arith.mulf %204, %6 : vector<16x32xf32>
    %206 = arith.addf %201, %205 : vector<16x32xf32>
    %c1_107 = arith.constant 1 : index
    %c0_108 = arith.constant 0 : index
    %c0_109 = arith.constant 0 : index
    %207 = vector.load %arg8[%c1_107, %c0_108, %c0_109] : memref<2x32x32xf32, #tpu.memory_space<vmem>>, vector<1x32x32xf32>
    %208 = vector.shape_cast %207 : vector<1x32x32xf32> to vector<32x32xf32>
    %cst_110 = arith.constant dense<0.000000e+00> : vector<16x32xf32>
    %209 = tpu.matmul %188, %208, %cst_110 {dimension_numbers = #tpu.dot_dimension_numbers<[1], [0], [0], [1], [0, 0, 1, 1], [], []>} : vector<16x32xf32>, vector<32x32xf32>, vector<16x32xf32> -> vector<16x32xf32>
    %c1_111 = arith.constant 1 : index
    %c0_112 = arith.constant 0 : index
    %c0_113 = arith.constant 0 : index
    %210 = vector.load %arg9[%c1_111, %c0_112, %c0_113] : memref<2x64x32xf32, #tpu.memory_space<vmem>>, vector<1x64x32xf32>
    %211 = vector.shape_cast %210 : vector<1x64x32xf32> to vector<64x32xf32>
    %cst_114 = arith.constant 0.000000e+00 : f32
    %212 = vector.broadcast %cst_114 : f32 to vector<16x32xf32>
    %213 = vector.extract_strided_slice %197 {offsets = [0, 0], sizes = [16, 16], strides = [1, 1]} : vector<16x64xf32> to vector<16x16xf32>
    %214 = vector.extract_strided_slice %206 {offsets = [0, 0], sizes = [16, 16], strides = [1, 1]} : vector<16x32xf32> to vector<16x16xf32>
    %215 = vector.extract_strided_slice %209 {offsets = [0, 0], sizes = [16, 16], strides = [1, 1]} : vector<16x32xf32> to vector<16x16xf32>
    %cst_115 = arith.constant dense<0.000000e+00> : vector<16x16xf32>
    %216 = tpu.matmul %213, %214, %cst_115 {dimension_numbers = #tpu.dot_dimension_numbers<[1], [1], [0], [0], [0, 0, 1, 0], [], []>} : vector<16x16xf32>, vector<16x16xf32>, vector<16x16xf32> -> vector<16x16xf32>
    %cst_116 = arith.constant 2.500000e-01 : f32
    %217 = vector.broadcast %cst_116 : f32 to vector<16x16xf32>
    %218 = arith.mulf %216, %217 : vector<16x16xf32>
    %219 = arith.addf %218, %7 : vector<16x16xf32>
    %cst_117 = arith.constant dense<0xFF800000> : vector<16xf32>
    %220 = vector.multi_reduction <maximumf>, %219, %cst_117 [1] : vector<16x16xf32> to vector<16xf32>
    %221 = vector.shape_cast %220 : vector<16xf32> to vector<16x1xf32>
    %222 = vector.broadcast %221 : vector<16x1xf32> to vector<16x16xf32>
    %223 = arith.subf %219, %222 : vector<16x16xf32>
    %224 = math.exp %223 : vector<16x16xf32>
    %cst_118 = arith.constant dense<0.000000e+00> : vector<16xf32>
    %225 = vector.multi_reduction <add>, %224, %cst_118 [1] : vector<16x16xf32> to vector<16xf32>
    %226 = vector.shape_cast %225 : vector<16xf32> to vector<16x1xf32>
    %227 = tpu.reciprocal %226 {approx = true} : vector<16x1xf32> -> vector<16x1xf32>
    %228 = vector.broadcast %227 : vector<16x1xf32> to vector<16x16xf32>
    %229 = arith.mulf %224, %228 : vector<16x16xf32>
    %cst_119 = arith.constant dense<0.000000e+00> : vector<16x16xf32>
    %230 = tpu.matmul %229, %215, %cst_119 {dimension_numbers = #tpu.dot_dimension_numbers<[1], [0], [0], [1], [0, 0, 1, 1], [], []>} : vector<16x16xf32>, vector<16x16xf32>, vector<16x16xf32> -> vector<16x16xf32>
    %231 = vector.extract_strided_slice %211 {offsets = [0, 0], sizes = [16, 32], strides = [1, 1]} : vector<64x32xf32> to vector<16x32xf32>
    %cst_120 = arith.constant dense<0.000000e+00> : vector<16x32xf32>
    %232 = tpu.matmul %230, %231, %cst_120 {dimension_numbers = #tpu.dot_dimension_numbers<[1], [0], [0], [1], [0, 0, 1, 1], [], []>} : vector<16x16xf32>, vector<16x32xf32>, vector<16x32xf32> -> vector<16x32xf32>
    %233 = arith.addf %212, %232 : vector<16x32xf32>
    %234 = vector.extract_strided_slice %197 {offsets = [0, 16], sizes = [16, 16], strides = [1, 1]} : vector<16x64xf32> to vector<16x16xf32>
    %235 = vector.extract_strided_slice %206 {offsets = [0, 0], sizes = [16, 16], strides = [1, 1]} : vector<16x32xf32> to vector<16x16xf32>
    %236 = vector.extract_strided_slice %209 {offsets = [0, 0], sizes = [16, 16], strides = [1, 1]} : vector<16x32xf32> to vector<16x16xf32>
    %cst_121 = arith.constant dense<0.000000e+00> : vector<16x16xf32>
    %237 = tpu.matmul %234, %235, %cst_121 {dimension_numbers = #tpu.dot_dimension_numbers<[1], [1], [0], [0], [0, 0, 1, 0], [], []>} : vector<16x16xf32>, vector<16x16xf32>, vector<16x16xf32> -> vector<16x16xf32>
    %cst_122 = arith.constant 2.500000e-01 : f32
    %238 = vector.broadcast %cst_122 : f32 to vector<16x16xf32>
    %239 = arith.mulf %237, %238 : vector<16x16xf32>
    %240 = arith.addf %239, %7 : vector<16x16xf32>
    %cst_123 = arith.constant dense<0xFF800000> : vector<16xf32>
    %241 = vector.multi_reduction <maximumf>, %240, %cst_123 [1] : vector<16x16xf32> to vector<16xf32>
    %242 = vector.shape_cast %241 : vector<16xf32> to vector<16x1xf32>
    %243 = vector.broadcast %242 : vector<16x1xf32> to vector<16x16xf32>
    %244 = arith.subf %240, %243 : vector<16x16xf32>
    %245 = math.exp %244 : vector<16x16xf32>
    %cst_124 = arith.constant dense<0.000000e+00> : vector<16xf32>
    %246 = vector.multi_reduction <add>, %245, %cst_124 [1] : vector<16x16xf32> to vector<16xf32>
    %247 = vector.shape_cast %246 : vector<16xf32> to vector<16x1xf32>
    %248 = tpu.reciprocal %247 {approx = true} : vector<16x1xf32> -> vector<16x1xf32>
    %249 = vector.broadcast %248 : vector<16x1xf32> to vector<16x16xf32>
    %250 = arith.mulf %245, %249 : vector<16x16xf32>
    %cst_125 = arith.constant dense<0.000000e+00> : vector<16x16xf32>
    %251 = tpu.matmul %250, %236, %cst_125 {dimension_numbers = #tpu.dot_dimension_numbers<[1], [0], [0], [1], [0, 0, 1, 1], [], []>} : vector<16x16xf32>, vector<16x16xf32>, vector<16x16xf32> -> vector<16x16xf32>
    %252 = vector.extract_strided_slice %211 {offsets = [16, 0], sizes = [16, 32], strides = [1, 1]} : vector<64x32xf32> to vector<16x32xf32>
    %cst_126 = arith.constant dense<0.000000e+00> : vector<16x32xf32>
    %253 = tpu.matmul %251, %252, %cst_126 {dimension_numbers = #tpu.dot_dimension_numbers<[1], [0], [0], [1], [0, 0, 1, 1], [], []>} : vector<16x16xf32>, vector<16x32xf32>, vector<16x32xf32> -> vector<16x32xf32>
    %254 = arith.addf %233, %253 : vector<16x32xf32>
    %255 = vector.extract_strided_slice %197 {offsets = [0, 32], sizes = [16, 16], strides = [1, 1]} : vector<16x64xf32> to vector<16x16xf32>
    %256 = vector.extract_strided_slice %206 {offsets = [0, 16], sizes = [16, 16], strides = [1, 1]} : vector<16x32xf32> to vector<16x16xf32>
    %257 = vector.extract_strided_slice %209 {offsets = [0, 16], sizes = [16, 16], strides = [1, 1]} : vector<16x32xf32> to vector<16x16xf32>
    %cst_127 = arith.constant dense<0.000000e+00> : vector<16x16xf32>
    %258 = tpu.matmul %255, %256, %cst_127 {dimension_numbers = #tpu.dot_dimension_numbers<[1], [1], [0], [0], [0, 0, 1, 0], [], []>} : vector<16x16xf32>, vector<16x16xf32>, vector<16x16xf32> -> vector<16x16xf32>
    %cst_128 = arith.constant 2.500000e-01 : f32
    %259 = vector.broadcast %cst_128 : f32 to vector<16x16xf32>
    %260 = arith.mulf %258, %259 : vector<16x16xf32>
    %261 = arith.addf %260, %7 : vector<16x16xf32>
    %cst_129 = arith.constant dense<0xFF800000> : vector<16xf32>
    %262 = vector.multi_reduction <maximumf>, %261, %cst_129 [1] : vector<16x16xf32> to vector<16xf32>
    %263 = vector.shape_cast %262 : vector<16xf32> to vector<16x1xf32>
    %264 = vector.broadcast %263 : vector<16x1xf32> to vector<16x16xf32>
    %265 = arith.subf %261, %264 : vector<16x16xf32>
    %266 = math.exp %265 : vector<16x16xf32>
    %cst_130 = arith.constant dense<0.000000e+00> : vector<16xf32>
    %267 = vector.multi_reduction <add>, %266, %cst_130 [1] : vector<16x16xf32> to vector<16xf32>
    %268 = vector.shape_cast %267 : vector<16xf32> to vector<16x1xf32>
    %269 = tpu.reciprocal %268 {approx = true} : vector<16x1xf32> -> vector<16x1xf32>
    %270 = vector.broadcast %269 : vector<16x1xf32> to vector<16x16xf32>
    %271 = arith.mulf %266, %270 : vector<16x16xf32>
    %cst_131 = arith.constant dense<0.000000e+00> : vector<16x16xf32>
    %272 = tpu.matmul %271, %257, %cst_131 {dimension_numbers = #tpu.dot_dimension_numbers<[1], [0], [0], [1], [0, 0, 1, 1], [], []>} : vector<16x16xf32>, vector<16x16xf32>, vector<16x16xf32> -> vector<16x16xf32>
    %273 = vector.extract_strided_slice %211 {offsets = [32, 0], sizes = [16, 32], strides = [1, 1]} : vector<64x32xf32> to vector<16x32xf32>
    %cst_132 = arith.constant dense<0.000000e+00> : vector<16x32xf32>
    %274 = tpu.matmul %272, %273, %cst_132 {dimension_numbers = #tpu.dot_dimension_numbers<[1], [0], [0], [1], [0, 0, 1, 1], [], []>} : vector<16x16xf32>, vector<16x32xf32>, vector<16x32xf32> -> vector<16x32xf32>
    %275 = arith.addf %254, %274 : vector<16x32xf32>
    %276 = vector.extract_strided_slice %197 {offsets = [0, 48], sizes = [16, 16], strides = [1, 1]} : vector<16x64xf32> to vector<16x16xf32>
    %277 = vector.extract_strided_slice %206 {offsets = [0, 16], sizes = [16, 16], strides = [1, 1]} : vector<16x32xf32> to vector<16x16xf32>
    %278 = vector.extract_strided_slice %209 {offsets = [0, 16], sizes = [16, 16], strides = [1, 1]} : vector<16x32xf32> to vector<16x16xf32>
    %cst_133 = arith.constant dense<0.000000e+00> : vector<16x16xf32>
    %279 = tpu.matmul %276, %277, %cst_133 {dimension_numbers = #tpu.dot_dimension_numbers<[1], [1], [0], [0], [0, 0, 1, 0], [], []>} : vector<16x16xf32>, vector<16x16xf32>, vector<16x16xf32> -> vector<16x16xf32>
    %cst_134 = arith.constant 2.500000e-01 : f32
    %280 = vector.broadcast %cst_134 : f32 to vector<16x16xf32>
    %281 = arith.mulf %279, %280 : vector<16x16xf32>
    %282 = arith.addf %281, %7 : vector<16x16xf32>
    %cst_135 = arith.constant dense<0xFF800000> : vector<16xf32>
    %283 = vector.multi_reduction <maximumf>, %282, %cst_135 [1] : vector<16x16xf32> to vector<16xf32>
    %284 = vector.shape_cast %283 : vector<16xf32> to vector<16x1xf32>
    %285 = vector.broadcast %284 : vector<16x1xf32> to vector<16x16xf32>
    %286 = arith.subf %282, %285 : vector<16x16xf32>
    %287 = math.exp %286 : vector<16x16xf32>
    %cst_136 = arith.constant dense<0.000000e+00> : vector<16xf32>
    %288 = vector.multi_reduction <add>, %287, %cst_136 [1] : vector<16x16xf32> to vector<16xf32>
    %289 = vector.shape_cast %288 : vector<16xf32> to vector<16x1xf32>
    %290 = tpu.reciprocal %289 {approx = true} : vector<16x1xf32> -> vector<16x1xf32>
    %291 = vector.broadcast %290 : vector<16x1xf32> to vector<16x16xf32>
    %292 = arith.mulf %287, %291 : vector<16x16xf32>
    %cst_137 = arith.constant dense<0.000000e+00> : vector<16x16xf32>
    %293 = tpu.matmul %292, %278, %cst_137 {dimension_numbers = #tpu.dot_dimension_numbers<[1], [0], [0], [1], [0, 0, 1, 1], [], []>} : vector<16x16xf32>, vector<16x16xf32>, vector<16x16xf32> -> vector<16x16xf32>
    %294 = vector.extract_strided_slice %211 {offsets = [48, 0], sizes = [16, 32], strides = [1, 1]} : vector<64x32xf32> to vector<16x32xf32>
    %cst_138 = arith.constant dense<0.000000e+00> : vector<16x32xf32>
    %295 = tpu.matmul %293, %294, %cst_138 {dimension_numbers = #tpu.dot_dimension_numbers<[1], [0], [0], [1], [0, 0, 1, 1], [], []>} : vector<16x16xf32>, vector<16x32xf32>, vector<16x32xf32> -> vector<16x32xf32>
    %296 = arith.addf %275, %295 : vector<16x32xf32>
    %297 = arith.addf %172, %296 : vector<16x32xf32>
    %c1_139 = arith.constant 1 : index
    %c0_140 = arith.constant 0 : index
    %c0_141 = arith.constant 0 : index
    %298 = vector.load %arg14[%c1_139, %c0_140, %c0_141] : memref<2x1x32xf32, #tpu.memory_space<vmem>>, vector<1x1x32xf32>
    %299 = vector.shape_cast %298 : vector<1x1x32xf32> to vector<1x32xf32>
    %300 = arith.mulf %297, %297 : vector<16x32xf32>
    %cst_142 = arith.constant dense<0.000000e+00> : vector<16xf32>
    %301 = vector.multi_reduction <add>, %300, %cst_142 [1] : vector<16x32xf32> to vector<16xf32>
    %302 = vector.shape_cast %301 : vector<16xf32> to vector<16x1xf32>
    %cst_143 = arith.constant 3.200000e+01 : f32
    %303 = vector.broadcast %cst_143 : f32 to vector<16x1xf32>
    %304 = arith.divf %302, %303 : vector<16x1xf32>
    %cst_144 = arith.constant 9.99999997E-7 : f32
    %305 = vector.broadcast %cst_144 : f32 to vector<16x1xf32>
    %306 = arith.addf %304, %305 : vector<16x1xf32>
    %307 = math.rsqrt %306 : vector<16x1xf32>
    %308 = vector.broadcast %307 : vector<16x1xf32> to vector<16x32xf32>
    %309 = arith.mulf %297, %308 : vector<16x32xf32>
    %cst_145 = arith.constant 1.000000e+00 : f32
    %310 = vector.broadcast %cst_145 : f32 to vector<1x32xf32>
    %311 = arith.addf %310, %299 : vector<1x32xf32>
    %312 = vector.broadcast %311 : vector<1x32xf32> to vector<16x32xf32>
    %313 = arith.mulf %309, %312 : vector<16x32xf32>
    %c1_146 = arith.constant 1 : index
    %c0_147 = arith.constant 0 : index
    %c0_148 = arith.constant 0 : index
    %314 = vector.load %arg10[%c1_146, %c0_147, %c0_148] : memref<2x32x64xf32, #tpu.memory_space<vmem>>, vector<1x32x64xf32>
    %315 = vector.shape_cast %314 : vector<1x32x64xf32> to vector<32x64xf32>
    %cst_149 = arith.constant dense<0.000000e+00> : vector<16x64xf32>
    %316 = tpu.matmul %313, %315, %cst_149 {dimension_numbers = #tpu.dot_dimension_numbers<[1], [0], [0], [1], [0, 0, 1, 1], [], []>} : vector<16x32xf32>, vector<32x64xf32>, vector<16x64xf32> -> vector<16x64xf32>
    %c1_150 = arith.constant 1 : index
    %c0_151 = arith.constant 0 : index
    %c0_152 = arith.constant 0 : index
    %317 = vector.load %arg11[%c1_150, %c0_151, %c0_152] : memref<2x32x64xf32, #tpu.memory_space<vmem>>, vector<1x32x64xf32>
    %318 = vector.shape_cast %317 : vector<1x32x64xf32> to vector<32x64xf32>
    %cst_153 = arith.constant dense<0.000000e+00> : vector<16x64xf32>
    %319 = tpu.matmul %313, %318, %cst_153 {dimension_numbers = #tpu.dot_dimension_numbers<[1], [0], [0], [1], [0, 0, 1, 1], [], []>} : vector<16x32xf32>, vector<32x64xf32>, vector<16x64xf32> -> vector<16x64xf32>
    %320 = arith.mulf %316, %316 : vector<16x64xf32>
    %321 = arith.mulf %316, %320 : vector<16x64xf32>
    %cst_154 = arith.constant 4.471500e-02 : f32
    %322 = vector.broadcast %cst_154 : f32 to vector<16x64xf32>
    %323 = arith.mulf %322, %321 : vector<16x64xf32>
    %324 = arith.addf %316, %323 : vector<16x64xf32>
    %cst_155 = arith.constant 0.797884583 : f32
    %325 = vector.broadcast %cst_155 : f32 to vector<16x64xf32>
    %326 = arith.mulf %325, %324 : vector<16x64xf32>
    %327 = math.tanh %326 : vector<16x64xf32>
    %cst_156 = arith.constant 1.000000e+00 : f32
    %328 = vector.broadcast %cst_156 : f32 to vector<16x64xf32>
    %329 = arith.addf %328, %327 : vector<16x64xf32>
    %cst_157 = arith.constant 5.000000e-01 : f32
    %330 = vector.broadcast %cst_157 : f32 to vector<16x64xf32>
    %331 = arith.mulf %330, %329 : vector<16x64xf32>
    %332 = arith.mulf %316, %331 : vector<16x64xf32>
    %333 = arith.mulf %332, %319 : vector<16x64xf32>
    %c1_158 = arith.constant 1 : index
    %c0_159 = arith.constant 0 : index
    %c0_160 = arith.constant 0 : index
    %334 = vector.load %arg12[%c1_158, %c0_159, %c0_160] : memref<2x64x32xf32, #tpu.memory_space<vmem>>, vector<1x64x32xf32>
    %335 = vector.shape_cast %334 : vector<1x64x32xf32> to vector<64x32xf32>
    %cst_161 = arith.constant dense<0.000000e+00> : vector<16x32xf32>
    %336 = tpu.matmul %333, %335, %cst_161 {dimension_numbers = #tpu.dot_dimension_numbers<[1], [0], [0], [1], [0, 0, 1, 1], [], []>} : vector<16x64xf32>, vector<64x32xf32>, vector<16x32xf32> -> vector<16x32xf32>
    %337 = arith.addf %297, %336 : vector<16x32xf32>
    %c0_162 = arith.constant 0 : index
    %c0_163 = arith.constant 0 : index
    %338 = vector.load %arg15[%c0_162, %c0_163] : memref<1x32xf32, #tpu.memory_space<vmem>>, vector<1x32xf32>
    %339 = arith.mulf %337, %337 : vector<16x32xf32>
    %cst_164 = arith.constant dense<0.000000e+00> : vector<16xf32>
    %340 = vector.multi_reduction <add>, %339, %cst_164 [1] : vector<16x32xf32> to vector<16xf32>
    %341 = vector.shape_cast %340 : vector<16xf32> to vector<16x1xf32>
    %cst_165 = arith.constant 3.200000e+01 : f32
    %342 = vector.broadcast %cst_165 : f32 to vector<16x1xf32>
    %343 = arith.divf %341, %342 : vector<16x1xf32>
    %cst_166 = arith.constant 9.99999997E-7 : f32
    %344 = vector.broadcast %cst_166 : f32 to vector<16x1xf32>
    %345 = arith.addf %343, %344 : vector<16x1xf32>
    %346 = math.rsqrt %345 : vector<16x1xf32>
    %347 = vector.broadcast %346 : vector<16x1xf32> to vector<16x32xf32>
    %348 = arith.mulf %337, %347 : vector<16x32xf32>
    %cst_167 = arith.constant 1.000000e+00 : f32
    %349 = vector.broadcast %cst_167 : f32 to vector<1x32xf32>
    %350 = arith.addf %349, %338 : vector<1x32xf32>
    %351 = vector.broadcast %350 : vector<1x32xf32> to vector<16x32xf32>
    %352 = arith.mulf %348, %351 : vector<16x32xf32>
    %c0_168 = arith.constant 0 : index
    %c0_169 = arith.constant 0 : index
    %353 = vector.load %arg16[%c0_168, %c0_169] : memref<16x32xf32, #tpu.memory_space<vmem>>, vector<16x32xf32>
    tpu.vector_store %arg16[%c0_168, %c0_169], %352 {strides = array<i32>} : memref<16x32xf32, #tpu.memory_space<vmem>>, vector<16x32xf32>,
    return
  }
}

</mosaic_0001>

<bundles_post_ra>
// kernel: tile.11
= control target key start
LH: loop header
LB: loop body
LE: loop exit
PB: predicated region body
PF: predicated region fallthrough
CT: control target
= control target key end

     0   :  { %vm83_vm0 = vcmask 1047556   ;;  %vm85_vm1 = vcmask 130048   ;;  %s196_s9 = smov 48   ;;  %s197_s14 = smov 16   ;;  %vm104_vm2 = vcmask 523648   ;;  %vm125_vm3 = vcmask 392448   ;;  %s290_s0 = inlined_call_operand.vmem [shape: f32[16,4,16], index: 0, kind: input, shape index: {}]   ;;  %s291_s1 = inlined_call_operand.vmem [shape: f32[16,64], index: 1, kind: output, shape index: {}]  }
   0x1   :  { %v181_v0 = vld [vmem:[%s290_s0 + $0x1c] sm:$0xf]  ;;  %v182_v1 = vld [vmem:[%s290_s0 + $0x18] sm:$0xf]  ;;  %v183_v2 = vld [vmem:[%s290_s0 + $0x14] sm:$0xf] }
   0x2   :  { %49 = vst [vmem:[#allocation0 + $0x38] sm:$0xf] %v181_v0  ;;  %54 = vst [vmem:[#allocation0 + $0x30] sm:$0xf] %v182_v1  ;;  %v184_v3 = vld [vmem:[%s290_s0 + $0x10] sm:$0xf] }
   0x3   :  { %59 = vst [vmem:[#allocation0 + $0x28] sm:$0xf] %v183_v2  ;;  %v185_v4 = vld [vmem:[%s290_s0 + $0xc] sm:$0xf]  ;;  %v186_v5 = vld [vmem:[%s290_s0 + $0x8] sm:$0xf] }
   0x4   :  { %64 = vst [vmem:[#allocation0 + $0x20] sm:$0xf] %v184_v3  ;;  %69 = vst [vmem:[#allocation0 + $0x18] sm:$0xf] %v185_v4  ;;  %v187_v6 = vld [vmem:[%s290_s0 + $0x4] sm:$0xf] }
   0x5   :  { %74 = vst [vmem:[#allocation0 + $0x10] sm:$0xf] %v186_v5  ;;  %v79_v7 = vld [vmem:[%s290_s0] sm:$0xf]  ;;  %78 = vst [vmem:[#allocation0 + $0x8] sm:$0xf] %v187_v6 }
   0x6   :  { %80 = vst [vmem:[#allocation0] sm:$0xf] %v79_v7  ;;  %v173_v8 = vld [vmem:[%s290_s0 + $0x3c] sm:$0xf]  ;;  %v174_v9 = vld [vmem:[%s290_s0 + $0x38] sm:$0xf] }
   0x7   :  { %9 = vst [vmem:[#allocation0 + $0x78] sm:$0xf] %v173_v8  ;;  %14 = vst [vmem:[#allocation0 + $0x70] sm:$0xf] %v174_v9  ;;  %v175_v10 = vld [vmem:[%s290_s0 + $0x34] sm:$0xf] }
   0x8   :  { %v176_v11 = vld [vmem:[%s290_s0 + $0x30] sm:$0xf]  ;;  %v177_v12 = vld [vmem:[%s290_s0 + $0x2c] sm:$0xf]  ;;  %19 = vst [vmem:[#allocation0 + $0x68] sm:$0xf] %v175_v10 }
   0x9   :  { %24 = vst [vmem:[#allocation0 + $0x60] sm:$0xf] %v176_v11  ;;  %29 = vst [vmem:[#allocation0 + $0x58] sm:$0xf] %v177_v12  ;;  %v178_v13 = vld [vmem:[%s290_s0 + $0x28] sm:$0xf] }
   0xa   :  { %v179_v14 = vld [vmem:[%s290_s0 + $0x24] sm:$0xf]  ;;  %v180_v15 = vld [vmem:[%s290_s0 + $0x20] sm:$0xf]  ;;  %34 = vst [vmem:[#allocation0 + $0x50] sm:$0xf] %v178_v13 }
   0xb   :  { %39 = vst [vmem:[#allocation0 + $0x48] sm:$0xf] %v179_v14  ;;  %44 = vst [vmem:[#allocation0 + $0x40] sm:$0xf] %v180_v15  ;;  %s195_s0 = smov 32   ;;  %vm146_vm4 = vcmask 261248  }
   0xc   :  { %v120_v16 = vld [vmem:[#allocation0 + $0x2] ss:$8 sm:$0xf0]   ;;  %v99_v17 = vld [vmem:[#allocation0 + $0x3] ss:$8 sm:$0xf0]  }
   0xd   :  { %v118_v18 = vld [vmem:[#allocation0 + $0x2] ss:$8 sm:$0xf]   ;;  %v97_v19 = vld [vmem:[#allocation0 + $0x3] ss:$8 sm:$0xf]  }
   0xe   :  { %v122_v20 = vsel %vm83_vm0, %v120_v16, %v118_v18  ;;  %v101_v21 = vsel %vm83_vm0, %v99_v17, %v97_v19  ;;  %v139_v24 = vld [vmem:[#allocation0 + $0x1] ss:$8 sm:$0xf]   ;;  %v81_v32 = vld [vmem:[#allocation0] ss:$8 sm:$0xf]  }
   0xf   :  { %123 = vrot.lane.b32.xlu1 %v122_v20, %s195_s0  ;;  %102 = vrot.lane.b32.xlu0 %v101_v21, %s196_s9  ;;  %v141_v25 = vld [vmem:[#allocation0 + $0x1] ss:$8 sm:$0xf0]   ;;  %v82_v33 = vld [vmem:[#allocation0] ss:$8 sm:$0xf0]  }
  0x10   :  { %v130_v22 = vld [vmem:[#allocation0 + $0x42] ss:$8 sm:$0xf0]   ;;  %v109_v23 = vld [vmem:[#allocation0 + $0x43] ss:$8 sm:$0xf0]   ;;  %v84_v34 = vsel %vm83_vm0, %v82_v33, %v81_v32  ;;  %v143_v38 = vsel %vm83_vm0, %v141_v25, %v139_v24 }
  0x11   :  { %v151_v31 = vld [vmem:[#allocation0 + $0x41] ss:$8 sm:$0xf0]   ;;  %v90_v36 = vld [vmem:[#allocation0 + $0x40] ss:$8 sm:$0xf0]  }
  0x12   :  { %v128_v26 = vld [vmem:[#allocation0 + $0x42] ss:$8 sm:$0xf]   ;;  %v107_v27 = vld [vmem:[#allocation0 + $0x43] ss:$8 sm:$0xf]  }
  0x13   :  { %v132_v28 = vsel %vm83_vm0, %v130_v22, %v128_v26  ;;  %v111_v29 = vsel %vm83_vm0, %v109_v23, %v107_v27  ;;  %v149_v30 = vld [vmem:[#allocation0 + $0x41] ss:$8 sm:$0xf]   ;;  %v88_v35 = vld [vmem:[#allocation0 + $0x40] ss:$8 sm:$0xf]  }
  0x14   :  { %133 = vrot.lane.b32.xlu1 %v132_v28, %s195_s0  ;;  %112 = vrot.lane.b32.xlu0 %v111_v29, %s196_s9  ;;  %v153_v37 = vsel %vm83_vm0, %v151_v31, %v149_v30  ;;  %86 = vst.msk [vmem:[%s291_s1] sm:$0xff] %vm85_vm1, %v84_v34   ;;  %v92_v39 = vsel %vm83_vm0, %v90_v36, %v88_v35 }
  0x15   :  { %188 = vst.msk [vmem:[%s291_s1 + $0x8] sm:$0xff] %vm85_vm1, %v92_v39  }
  0x18   :  { %154 = vrot.lane.b32.xlu1 %v153_v37, %s197_s14  ;;  %144 = vrot.lane.b32.xlu0 %v143_v38, %s197_s14 }
  0x81   :  { %v124_v40 = vpop.permute.xlu1 %123   ;;  %v103_v41 = vpop.permute.xlu0 %102  }
  0x82   :  { %105 = vst.msk [vmem:[%s291_s1] sm:$0xff] %vm104_vm2, %v103_v41  }
  0x83   :  { %126 = vst.msk [vmem:[%s291_s1] sm:$0xff] %vm125_vm3, %v124_v40  }
  0x86   :  { %v134_v42 = vpop.permute.xlu1 %133   ;;  %v113_v43 = vpop.permute.xlu0 %112  }
  0x87   :  { %189 = vst.msk [vmem:[%s291_s1 + $0x8] sm:$0xff] %vm104_vm2, %v113_v43  }
  0x88   :  { %190 = vst.msk [vmem:[%s291_s1 + $0x8] sm:$0xff] %vm125_vm3, %v134_v42  }
  0x8a   :  { %v155_v44 = vpop.permute.xlu1 %154   ;;  %v145_v45 = vpop.permute.xlu0 %144  }
  0x8b   :  { %191 = vst.msk [vmem:[%s291_s1 + $0x8] sm:$0xff] %vm146_vm4, %v155_v44   ;;  %147 = vst.msk [vmem:[%s291_s1] sm:$0xff] %vm146_vm4, %v145_v45  }

// kernel: gemma_forward.1
= control target key start
LH: loop header
LB: loop body
LE: loop exit
PB: predicated region body
PF: predicated region fallthrough
CT: control target
= control target key end

     0   :  { %s5409_s0 = inlined_call_operand.vmem [shape: f32[16,32], index: 0, kind: input, shape index: {}]   ;;  %s5410_s1 = inlined_call_operand.vmem [shape: f32[16,64], index: 1, kind: input, shape index: {}]   ;;  %s5411_s2 = inlined_call_operand.vmem [shape: f32[16,64], index: 2, kind: input, shape index: {}]   ;;  %s5412_s3 = inlined_call_operand.vmem [shape: f32[16,16], index: 3, kind: input, shape index: {}]   ;;  %s5413_s4 = inlined_call_operand.vmem [shape: f32[2,32,64], index: 4, kind: input, shape index: {}]   ;;  %s5414_s5 = inlined_call_operand.vmem [shape: f32[2,32,64], index: 5, kind: input, shape index: {}]   ;;  %s5415_s6 = inlined_call_operand.vmem [shape: f32[2,32,32], index: 6, kind: input, shape index: {}]   ;;  %s5416_s7 = inlined_call_operand.vmem [shape: f32[2,32,32], index: 7, kind: input, shape index: {}]   ;;  %s5417_s8 = inlined_call_operand.vmem [shape: f32[2,32,32], index: 8, kind: input, shape index: {}]   ;;  %s5418_s9 = inlined_call_operand.vmem [shape: f32[2,64,32], index: 9, kind: input, shape index: {}]   ;;  %s5419_s10 = inlined_call_operand.vmem [shape: f32[2,32,64], index: 10, kind: input, shape index: {}]   ;;  %s5420_s11 = inlined_call_operand.vmem [shape: f32[2,32,64], index: 11, kind: input, shape index: {}]   ;;  %s5421_s12 = inlined_call_operand.vmem [shape: f32[2,64,32], index: 12, kind: input, shape index: {}]   ;;  %s5422_s13 = inlined_call_operand.vmem [shape: f32[2,1,32], index: 13, kind: input, shape index: {}]   ;;  %s5423_s14 = inlined_call_operand.vmem [shape: f32[2,1,32], index: 14, kind: input, shape index: {}]   ;;  %s5424_s15 = inlined_call_operand.vmem [shape: f32[1,32], index: 15, kind: input, shape index: {}]   ;;  %s5425_s16 = inlined_call_operand.hbm [shape: f32[16,32], index: 16, kind: output, shape index: {}]  }
   0x1   :  { %5427 = sst [smem:[#allocation5_spill]] %s5409_s0 }
   0x2   :  { %s5428_s23 = sld [smem:[#allocation5_spill]] }
   0x8   :  { %v54_v0 = vld [vmem:[%s5428_s23] sm:$0xff]  ;;  %v55_v1 = vld [vmem:[%s5428_s23 + $0x8] sm:$0xff] }
   0x9   :  { %21 = vsyncpa [#allocation3], 0  ;;  %v4760_v2 = vmul.f32 5.656854, %v54_v0  ;;  %v4762_v3 = vmul.f32 5.656854, %v55_v1  ;;  %v85_v23 = vlaneseq }
   0xa   :  { %vm67_vm0 = vcmask 261120   ;;  %v95_v8 = vld [vmem:[%s5413_s4 + $0x18] sm:$0xff]  ;;  %v94_v10 = vld [vmem:[%s5413_s4 + $0x10] sm:$0xff]  ;;  %v93_v12 = vld [vmem:[%s5413_s4 + $0x8] sm:$0xff]  ;;  %vm513_vm1 = vcmask 130048   ;;  %s4664_s19 = smov 96  }
   0xb   :  { %v65_v4 = vmul.f32 %v4760_v2, %v4760_v2  ;;  %v66_v5 = vmul.f32 %v4762_v3, %v4762_v3  ;;  %v265_v9 = vld [vmem:[%s5415_s6 + $0x18] sm:$0xff]  ;;  %4181 = vmatprep.subr.mxu1 %v95_v8  ;;  %v264_v11 = vld [vmem:[%s5415_s6 + $0x10] sm:$0xff]  ;;  %v263_v13 = vld [vmem:[%s5415_s6 + $0x8] sm:$0xff]  ;;  %v86_v25 = vshrl.u32 %v85_v23, 7  ;;  %s4665_s20 = smov 80   ;;  %vm1842_vm2 = vcmask 523264  }
   0xc   :  { %4203 = vmatprep.subr.mxu0 %v265_v9  ;;  %4182 = vmatpush3.msra.mxu1 %v95_v8  ;;  %v92_v14 = vld [vmem:[%s5413_s4] sm:$0xff]  ;;  %v182_v16 = vld [vmem:[%s5414_s5 + $0x18] sm:$0xff]  ;;  %v181_v36 = vld [vmem:[%s5414_s5 + $0x10] sm:$0xff] }
   0xd   :  { %v68_v6 = vsel %vm67_vm0, %v65_v4, 0.0  ;;  %v71_v7 = vsel %vm67_vm0, %v66_v5, 0.0  ;;  %4204 = vmatpush3.msra.mxu0 %v265_v9  ;;  %4183 = vmatprep.subr.mxu1 %v94_v10  ;;  %v262_v15 = vld [vmem:[%s5415_s6] sm:$0xff]  ;;  %v429_v17 = vld [vmem:[%s5417_s8 + $0x18] sm:$0xff]  ;;  %v4803_v28 = vsub.s32 0, %v86_v25  ;;  %v428_v37 = vld [vmem:[%s5417_s8 + $0x10] sm:$0xff] }
   0xe   :  { %69 = vadd.xlane.f32.xlu0 %v68_v6  ;;  %4205 = vmatprep.subr.mxu0 %v264_v11  ;;  %v64_v26 = vld [vmem:[%s5422_s13] sm:$0x1]  ;;  %v180_v38 = vld [vmem:[%s5414_s5 + $0x8] sm:$0xff]  ;;  %v346_v42 = vld [vmem:[%s5416_s7 + $0x18] sm:$0xff] }
   0xf   :  { %4184 = vmatpush3.msra.mxu1 %v94_v10  ;;  %4206 = vmatpush3.msra.mxu0 %v264_v11  ;;  %v83_v27 = vadd.f32 1.0, %v64_v26  ;;  %v427_v39 = vld [vmem:[%s5417_s8 + $0x8] sm:$0xff]  ;;  %v179_v40 = vld [vmem:[%s5414_s5] sm:$0xff]  ;;  %v345_v43 = vld [vmem:[%s5416_s7 + $0x10] sm:$0xff] }
  0x10   :  { %4185 = vmatprep.subr.mxu1 %v93_v12  ;;  %4207 = vmatprep.subr.mxu0 %v263_v13  ;;  %v426_v41 = vld [vmem:[%s5417_s8] sm:$0xff]  ;;  %v344_v44 = vld [vmem:[%s5416_s7 + $0x8] sm:$0xff] }
  0x11   :  { %4186 = vmatpush3.msra.mxu1 %v93_v12  ;;  %4208 = vmatpush3.msra.mxu0 %v263_v13  ;;  %v88_v29 = vrot.slane %v83_v27, %v4803_v28  ;;  %v343_v45 = vld [vmem:[%s5416_s7] sm:$0xff]  ;;  %v4863_v54 = vld [vmem:[%s5411_s2 + $0x8] sm:$0xff] }
  0x12   :  { %72 = vadd.xlane.f32.xlu0 %v71_v7  ;;  %4187 = vmatprep.subr.mxu1 %v92_v14  ;;  %v4851_v50 = vld [vmem:[%s5410_s1] sm:$0xff]  ;;  %v4874_v59 = vld [vmem:[%s5410_s1 + $0x8] sm:$0xff] }
  0x13   :  { %4209 = vmatprep.subr.mxu0 %v262_v15  ;;  %4188 = vmatpush3.msra.mxu1 %v92_v14  ;;  %v4856_v52 = vld [vmem:[%s5411_s2] sm:$0xff]  ;;  %s4663_s2 = smov 112   ;;  %v4912_v13 = vld [vmem:[%s5412_s3 + $0x8] sm:$0xff] }
  0x14   :  { %4210 = vmatpush3.msra.mxu0 %v262_v15  ;;  %4192 = vmatprep.subr.mxu1 %v182_v16 }
  0x15   :  { %4225 = vmatprep.subr.mxu0 %v429_v17 }
  0x97   :  { %v70_v18 = vpop.xlane.xlu0 %69 }
  0x98   :  { %v75_v19 = vmul.f32 0.03125, %v70_v18 }
  0x9a   :  { %v77_v20 = vadd.f32 1e-06, %v75_v19 }
  0x9b   :  { %v73_v21 = vpop.xlane.xlu0 %72 }
  0x9c   :  { %4547 = vrsqrt.f32 %v77_v20  ;;  %v76_v22 = vmul.f32 0.03125, %v73_v21 }
  0x9e   :  { %v78_v24 = vadd.f32 1e-06, %v76_v22 }
  0xa0   :  { %4549 = vrsqrt.f32 %v78_v24 }
  0xa9   :  { %v4548_v30 = vpop.eup %4547 }
  0xaa   :  { %v81_v31 = vmul.f32 %v4548_v30, %v4760_v2 }
  0xac   :  { %v90_v32 = vmul.f32 %v88_v29, %v81_v31 }
  0xad   :  { %v4550_v33 = vpop.eup %4549 }
  0xae   :  { %4189 = vmatprep.mubr.msk.f32.mxu1 %vm67_vm0, %v90_v32  ;;  %4211 = vmatprep.mubr.msk.f32.mxu0 %vm67_vm0, %v90_v32  ;;  %v82_v34 = vmul.f32 %v4550_v33, %v4762_v3 }
  0xb0   :  { %v91_v35 = vmul.f32 %v88_v29, %v82_v34 }
  0xb2   :  { %4190 = vmatmul.mubr.msk.f32.vlgmr.msra.gmra.mxu1 %vm67_vm0, %v91_v35  ;;  %4212 = vmatmul.mubr.msk.f32.vlgmr.msra.gmra.mxu0 %vm67_vm0, %v91_v35 }
  0xb3   :  { %4193 = vmatpush3.msra.mxu1 %v182_v16  ;;  %4226 = vmatpush3.msra.mxu0 %v429_v17  ;;  %v4917_v16 = vld [vmem:[%s5412_s3] sm:$0xff] }
  0xb4   :  { %4194 = vmatprep.subr.mxu1 %v181_v36  ;;  %4200 = vmatprep.mubr.msk.f32.mxu1 %vm67_vm0, %v90_v32 }
  0xb5   :  { %4227 = vmatprep.subr.mxu0 %v428_v37  ;;  %4233 = vmatprep.mubr.msk.f32.mxu0 %vm67_vm0, %v90_v32 }
  0xb6   :  { %4195 = vmatpush3.msra.mxu1 %v181_v36  ;;  %4228 = vmatpush3.msra.mxu0 %v428_v37 }
  0xb7   :  { %4196 = vmatprep.subr.mxu1 %v180_v38  ;;  %4229 = vmatprep.subr.mxu0 %v427_v39 }
  0xb8   :  { %4197 = vmatpush3.msra.mxu1 %v180_v38  ;;  %4230 = vmatpush3.msra.mxu0 %v427_v39 }
  0xb9   :  { %4198 = vmatprep.subr.mxu1 %v179_v40  ;;  %4231 = vmatprep.subr.mxu0 %v426_v41 }
  0xba   :  { %4199 = vmatpush3.msra.mxu1 %v179_v40  ;;  %4232 = vmatpush3.msra.mxu0 %v426_v41 }
  0xbb   :  { %4201 = vmatmul.mubr.msk.f32.vlgmr.msra.gmra.mxu1 %vm67_vm0, %v91_v35  ;;  %4214 = vmatprep.subr.mxu1 %v346_v42 }
  0xbc   :  { %4234 = vmatmul.mubr.msk.f32.vlgmr.msra.gmra.mxu0 %vm67_vm0, %v91_v35  ;;  %4215 = vmatpush3.msra.mxu1 %v346_v42 }
  0xbd   :  { %4222 = vmatprep.mubr.msk.f32.mxu1 %vm67_vm0, %v90_v32  ;;  %4216 = vmatprep.subr.mxu1 %v345_v43 }
  0xbe   :  { %4217 = vmatpush3.msra.mxu1 %v345_v43 }
  0xbf   :  { %4218 = vmatprep.subr.mxu1 %v344_v44 }
  0xc0   :  { %4219 = vmatpush3.msra.mxu1 %v344_v44 }
  0xc1   :  { %4220 = vmatprep.subr.mxu1 %v343_v45 }
  0xc2   :  { %4221 = vmatpush3.msra.mxu1 %v343_v45 }
  0xc3   :  { %4223 = vmatmul.mubr.msk.f32.vlgmr.msra.gmra.mxu1 %vm67_vm0, %v91_v35 }
 0x172   :  { %v4191_v46 = vpop.f32.mrf.mxu1  ;;  %v4213_v47 = vpop.f32.mrf.mxu0 }
 0x173   :  { %v178_v62 = vmul.f32 %v4191_v46, %v4874_v59  ;;  %v342_v0 = vmul.f32 %v4213_v47, %v4874_v59 }
 0x174   :  { %v168_v48 = vpop.f32.mrf.mxu1  ;;  %v332_v49 = vpop.f32.mrf.mxu0 }
 0x175   :  { %v177_v56 = vmul.f32 %v168_v48, %v4851_v50  ;;  %v341_v6 = vmul.f32 %v332_v49, %v4851_v50 }
 0x17b   :  { %v4202_v51 = vpop.f32.mrf.mxu1 }
 0x17c   :  { %v4858_v53 = vpop.f32.mrf.mxu0  ;;  %v259_v60 = vmul.f32 %v4202_v51, %v4863_v54 }
 0x17d   :  { %4243 = vmatprep.subr.mxu0 %v4858_v53  ;;  %v249_v55 = vpop.f32.mrf.mxu1 }
 0x17e   :  { %v258_v57 = vmul.f32 %v249_v55, %v4856_v52  ;;  %v4868_v58 = vpop.f32.mrf.mxu0  ;;  %4244 = vmatpush3.msra.mxu0 %v4858_v53  ;;  %v261_v1 = vadd.f32 %v259_v60, %v178_v62 }
 0x17f   :  { %4245 = vmatprep.subr.mxu0 %v4868_v58 }
 0x180   :  { %v4878_v61 = vadd.f32 %v258_v57, %v177_v56  ;;  %4246 = vmatpush3.msra.mxu0 %v4868_v58 }
 0x181   :  { %4257 = vmatprep.subr.mxu0 %v4858_v53 }
 0x182   :  { %708 = vrot.lane.b32.xlu1 %v4878_v61, %s4663_s2  ;;  %4240 = vmatprep.mubr.msk.f32.mxu1 %vm513_vm1, %v4878_v61 }
 0x183   :  { %v4224_v63 = vpop.f32.mrf.mxu1 }
 0x184   :  { %v423_v4 = vmul.f32 %v4224_v63, %v4863_v54 }
 0x185   :  { %v413_v5 = vpop.f32.mrf.mxu1 }
 0x186   :  { %v4890_v7 = vadd.f32 %v423_v4, %v342_v0  ;;  %v422_v8 = vmul.f32 %v413_v5, %v4856_v52  ;;  %710 = vrot.lane.b32.xlu1 %v261_v1, %s4663_s2  ;;  %v508_v0 = vld [vmem:[%s5418_s9 + $0x18] sm:$0xff] }
 0x188   :  { %v424_v9 = vadd.f32 %v422_v8, %v341_v6  ;;  %4236 = vmatprep.subr.msk.mxu1 %vm513_vm1, %v4890_v7 }
 0x189   :  { %4237 = vmatpush3.xpose.msk.msra.mxu1 %vm513_vm1, %v4890_v7 }
 0x18a   :  { %4238 = vmatprep.subr.msk.mxu1 %vm513_vm1, %v424_v9 }
 0x18d   :  { %4239 = vmatpush3.xpose.msk.msra.mxu1 %vm513_vm1, %v424_v9 }
 0x18e   :  { %4250 = vmatprep.subr.msk.mxu1 %vm513_vm1, %v4890_v7 }
 0x190   :  { %4241 = vmatmul.mubr.msk.f32.vlgmr.msra.gmra.mxu1 %vm513_vm1, %v261_v1 }
 0x191   :  { %4251 = vmatpush3.xpose.msk.msra.mxu1 %vm513_vm1, %v4890_v7 }
 0x192   :  { %4252 = vmatprep.subr.msk.mxu1 %vm513_vm1, %v424_v9 }
 0x195   :  { %4253 = vmatpush3.xpose.msk.msra.mxu1 %vm513_vm1, %v424_v9 }
 0x1f4   :  { %v709_v10 = vpop.permute.xlu1 %708 }
 0x1f5   :  { %4254 = vmatprep.mubr.msk.f32.mxu1 %vm513_vm1, %v709_v10  ;;  %v507_v10 = vld [vmem:[%s5418_s9 + $0x10] sm:$0xff] }
 0x1f8   :  { %v711_v11 = vpop.permute.xlu1 %710 }
 0x1f9   :  { %4255 = vmatmul.mubr.msk.f32.vlgmr.msra.gmra.mxu1 %vm513_vm1, %v711_v11 }
 0x250   :  { %v4242_v12 = vpop.f32.mrf.mxu1 }
 0x251   :  { %v602_v14 = vmul.f32 0.25, %v4242_v12 }
 0x252   :  { %v592_v15 = vpop.f32.mrf.mxu1 }
 0x253   :  { %v601_v17 = vmul.f32 0.25, %v592_v15  ;;  %v604_v18 = vadd.f32 %v602_v14, %v4912_v13 }
 0x255   :  { %v608_v19 = vsel %vm513_vm1, %v604_v18, -inf  ;;  %v603_v20 = vadd.f32 %v601_v17, %v4917_v16 }
 0x256   :  { %609 = vmax.xlane.f32.xlu1 %v608_v19 }
 0x257   :  { %v605_v21 = vsel %vm513_vm1, %v603_v20, -inf }
 0x258   :  { %606 = vmax.xlane.f32.xlu0 %v605_v21 }
 0x267   :  { %1064 = vrot.lane.b32.xlu1 %v424_v9, %s4663_s2 }
 0x26b   :  { %1062 = vrot.lane.b32.xlu1 %v261_v1, %s4664_s19 }
 0x26f   :  { %1351 = vrot.lane.b32.xlu1 %v261_v1, %s4665_s20  ;;  %v505_v1 = vld [vmem:[%s5418_s9] sm:$0xff] }
 0x2b9   :  { %v4256_v22 = vpop.f32.mrf.mxu1 }
 0x2ba   :  { %v792_v24 = vmul.f32 0.25, %v4256_v22 }
 0x2bb   :  { %v782_v23 = vpop.f32.mrf.mxu1 }
 0x2bc   :  { %v791_v25 = vmul.f32 0.25, %v782_v23  ;;  %v794_v29 = vadd.f32 %v792_v24, %v4912_v13 }
 0x2be   :  { %v793_v26 = vadd.f32 %v791_v25, %v4917_v16  ;;  %v798_v30 = vsel %vm513_vm1, %v794_v29, -inf }
 0x2c0   :  { %v795_v27 = vsel %vm513_vm1, %v793_v26, -inf }
 0x2c1   :  { %796 = vmax.xlane.f32.xlu0 %v795_v27 }
 0x2c5   :  { %799 = vmax.xlane.f32.xlu0 %v798_v30 }
 0x2df   :  { %v610_v31 = vpop.xlane.xlu1 %609 }
 0x2e0   :  { %v612_v32 = vsub.f32 %v604_v18, %v610_v31 }
 0x2e1   :  { %v607_v33 = vpop.xlane.xlu0 %606 }
 0x2e2   :  { %v615_v34 = vmul.f32 1.442695, %v612_v32  ;;  %v611_v35 = vsub.f32 %v603_v20, %v607_v33 }
 0x2e3   :  { %v1065_v19 = vpop.permute.xlu1 %1064 }
 0x2e4   :  { %4551 = vpow2.f32 %v615_v34  ;;  %v613_v36 = vmul.f32 1.442695, %v611_v35 }
 0x2e6   :  { %4553 = vpow2.f32 %v613_v36 }
 0x2e7   :  { %v1063_v20 = vpop.permute.xlu1 %1062 }
 0x2eb   :  { %v1352_v22 = vpop.permute.xlu1 %1351 }
 0x2f1   :  { %v4552_v37 = vpop.eup %4551 }
 0x2f2   :  { %v620_v38 = vsel %vm513_vm1, %v4552_v37, 0.0 }
 0x2f3   :  { %v4554_v39 = vpop.eup %4553  ;;  %621 = vadd.xlane.f32.xlu0 %v620_v38 }
 0x2f4   :  { %v617_v40 = vsel %vm513_vm1, %v4554_v39, 0.0 }
 0x2f7   :  { %618 = vadd.xlane.f32.xlu0 %v617_v40 }
 0x34a   :  { %v797_v41 = vpop.xlane.xlu0 %796 }
 0x34b   :  { %v801_v42 = vsub.f32 %v793_v26, %v797_v41 }
 0x34d   :  { %v803_v43 = vmul.f32 1.442695, %v801_v42 }
 0x34e   :  { %v800_v44 = vpop.xlane.xlu0 %799 }
 0x34f   :  { %4555 = vpow2.f32 %v803_v43  ;;  %v802_v45 = vsub.f32 %v794_v29, %v800_v44 }
 0x351   :  { %v805_v46 = vmul.f32 1.442695, %v802_v45 }
 0x353   :  { %4557 = vpow2.f32 %v805_v46 }
 0x35c   :  { %v4556_v47 = vpop.eup %4555 }
 0x35d   :  { %v807_v48 = vsel %vm513_vm1, %v4556_v47, 0.0 }
 0x35e   :  { %808 = vadd.xlane.f32.xlu0 %v807_v48 }
 0x360   :  { %v4558_v49 = vpop.eup %4557 }
 0x361   :  { %v810_v51 = vsel %vm513_vm1, %v4558_v49, 0.0 }
 0x362   :  { %811 = vadd.xlane.f32.xlu0 %v810_v51 }
 0x378   :  { %1066 = vrot.lane.b32.xlu0 %v4890_v7, %s4663_s2 }
 0x37c   :  { %1060 = vrot.lane.b32.xlu0 %v4878_v61, %s4664_s19  ;;  %v622_v55 = vpop.xlane.xlu0 %621 }
 0x37d   :  { %4559 = vrcp.f32 %v622_v55 }
 0x380   :  { %1349 = vrot.lane.b32.xlu0 %v4878_v61, %s4665_s20  ;;  %v619_v56 = vpop.xlane.xlu0 %618  ;;  %v506_v61 = vld [vmem:[%s5418_s9 + $0x8] sm:$0xff] }
 0x381   :  { %4561 = vrcp.f32 %v619_v56  ;;  %4271 = vmatprep.subr.mxu1 %v506_v61 }
 0x382   :  { %4272 = vmatpush3.msra.mxu1 %v506_v61 }
 0x383   :  { %4273 = vmatprep.subr.mxu1 %v505_v1 }
 0x384   :  { %4274 = vmatpush3.msra.mxu1 %v505_v1  ;;  %v510_v1 = vld [vmem:[%s5418_s9 + $0x28] sm:$0xff] }
 0x38a   :  { %v4560_v57 = vpop.eup %4559 }
 0x38b   :  { %v626_v63 = vmul.f32 %v4560_v57, %v4552_v37 }
 0x38e   :  { %v4562_v60 = vpop.eup %4561 }
 0x38f   :  { %v625_v62 = vmul.f32 %v4562_v60, %v4554_v39 }
 0x391   :  { %4247 = vmatprep.mubr.msk.f32.mxu0 %vm513_vm1, %v625_v62 }
 0x392   :  { %4248 = vmatmul.mubr.msk.f32.vlgmr.msra.gmra.mxu0 %vm513_vm1, %v626_v63 }
 0x393   :  { %4258 = vmatpush3.msra.mxu0 %v4858_v53 }
 0x394   :  { %4259 = vmatprep.subr.mxu0 %v4868_v58 }
 0x395   :  { %4260 = vmatpush3.msra.mxu0 %v4868_v58 }
 0x396   :  { %4264 = vmatprep.subr.mxu0 %v508_v0 }
 0x3e7   :  { %v809_v4 = vpop.xlane.xlu0 %808 }
 0x3e8   :  { %4563 = vrcp.f32 %v809_v4 }
 0x3eb   :  { %v812_v5 = vpop.xlane.xlu0 %811 }
 0x3ec   :  { %4565 = vrcp.f32 %v812_v5 }
 0x3ef   :  { %v1067_v11 = vpop.permute.xlu0 %1066 }
 0x3f3   :  { %v1061_v18 = vpop.permute.xlu0 %1060 }
 0x3f5   :  { %v4564_v6 = vpop.eup %4563 }
 0x3f6   :  { %v815_v7 = vmul.f32 %v4564_v6, %v4556_v47 }
 0x3f7   :  { %v1350_v21 = vpop.permute.xlu0 %1349 }
 0x3f8   :  { %4261 = vmatprep.mubr.msk.f32.mxu0 %vm513_vm1, %v815_v7 }
 0x3f9   :  { %v4566_v8 = vpop.eup %4565 }
 0x3fa   :  { %v816_v9 = vmul.f32 %v4566_v8, %v4558_v49  ;;  %v509_v8 = vld [vmem:[%s5418_s9 + $0x20] sm:$0xff] }
 0x3fc   :  { %4262 = vmatmul.mubr.msk.f32.vlgmr.msra.gmra.mxu0 %vm513_vm1, %v816_v9 }
 0x3fd   :  { %4265 = vmatpush3.msra.mxu0 %v508_v0 }
 0x3fe   :  { %4266 = vmatprep.subr.mxu0 %v507_v10 }
 0x3ff   :  { %4267 = vmatpush3.msra.mxu0 %v507_v10 }
 0x400   :  { %4278 = vmatprep.subr.msk.mxu0 %vm513_vm1, %v1067_v11 }
 0x452   :  { %v4249_v12 = vpop.f32.mrf.mxu0 }
 0x454   :  { %v699_v14 = vpop.f32.mrf.mxu0 }
 0x455   :  { %4275 = vmatprep.mubr.msk.f32.mxu1 %vm513_vm1, %v699_v14 }
 0x456   :  { %4276 = vmatmul.mubr.msk.f32.vlgmr.msra.gmra.mxu1 %vm513_vm1, %v4249_v12 }
 0x4bc   :  { %v4263_v15 = vpop.f32.mrf.mxu0 }
 0x4be   :  { %v889_v17 = vpop.f32.mrf.mxu0 }
 0x4bf   :  { %4268 = vmatprep.mubr.msk.f32.mxu0 %vm513_vm1, %v889_v17 }
 0x4c0   :  { %4269 = vmatmul.mubr.msk.f32.vlgmr.msra.gmra.mxu0 %vm513_vm1, %v4263_v15 }
 0x4c1   :  { %4279 = vmatpush3.xpose.msk.msra.mxu0 %vm513_vm1, %v1067_v11  ;;  %4282 = vmatprep.mubr.msk.f32.mxu0 %vm513_vm1, %v1061_v18 }
 0x4c2   :  { %4280 = vmatprep.subr.msk.mxu0 %vm513_vm1, %v1065_v19 }
 0x4c5   :  { %4281 = vmatpush3.xpose.msk.msra.mxu0 %vm513_vm1, %v1065_v19 }
 0x4c6   :  { %4299 = vmatprep.subr.msk.mxu0 %vm513_vm1, %v1067_v11 }
 0x4c8   :  { %4283 = vmatmul.mubr.msk.f32.vlgmr.msra.gmra.mxu0 %vm513_vm1, %v1063_v20 }
 0x4c9   :  { %4300 = vmatpush3.xpose.msk.msra.mxu0 %vm513_vm1, %v1067_v11  ;;  %4303 = vmatprep.mubr.msk.f32.mxu0 %vm513_vm1, %v1350_v21 }
 0x4ca   :  { %4301 = vmatprep.subr.msk.mxu0 %vm513_vm1, %v1065_v19 }
 0x4cd   :  { %4302 = vmatpush3.xpose.msk.msra.mxu0 %vm513_vm1, %v1065_v19 }
 0x4d0   :  { %4304 = vmatmul.mubr.msk.f32.vlgmr.msra.gmra.mxu0 %vm513_vm1, %v1352_v22 }
 0x516   :  { %v4277_v17 = vpop.f32.mrf.mxu1 }
 0x518   :  { %v1051_v18 = vpop.f32.mrf.mxu1 }
 0x580   :  { %v4975_v23 = vpop.f32.mrf.mxu0 }
 0x582   :  { %v4977_v24 = vpop.f32.mrf.mxu0 }
 0x588   :  { %v4284_v25 = vpop.f32.mrf.mxu0 }
 0x589   :  { %v1152_v26 = vmul.f32 0.25, %v4284_v25 }
 0x58a   :  { %v1142_v27 = vpop.f32.mrf.mxu0 }
 0x58b   :  { %v1151_v29 = vmul.f32 0.25, %v1142_v27  ;;  %v1154_v30 = vadd.f32 %v1152_v26, %v4912_v13 }
 0x58d   :  { %v1158_v31 = vsel %vm513_vm1, %v1154_v30, -inf  ;;  %v1153_v32 = vadd.f32 %v1151_v29, %v4917_v16  ;;  %v512_v29 = vld [vmem:[%s5418_s9 + $0x38] sm:$0xff] }
 0x58e   :  { %1159 = vmax.xlane.f32.xlu1 %v1158_v31  ;;  %v1057_v31 = vadd.f32 %v4277_v17, %v4975_v23  ;;  %v1836_v17 = vld [vmem:[%s5421_s12 + $0x10] sm:$0xff] }
 0x58f   :  { %v1155_v33 = vsel %vm513_vm1, %v1153_v32, -inf }
 0x590   :  { %1156 = vmax.xlane.f32.xlu0 %v1155_v33  ;;  %v4305_v34 = vpop.f32.mrf.mxu0  ;;  %v1052_v33 = vadd.f32 %v1051_v18, %v4977_v24  ;;  %v1835_v18 = vld [vmem:[%s5421_s12 + $0x8] sm:$0xff] }
 0x591   :  { %v1433_v56 = vmul.f32 0.25, %v4305_v34 }
 0x592   :  { %v1423_v35 = vpop.f32.mrf.mxu0 }
 0x593   :  { %v1432_v36 = vmul.f32 0.25, %v1423_v35  ;;  %v1435_v57 = vadd.f32 %v1433_v56, %v4912_v13 }
 0x595   :  { %v1434_v37 = vadd.f32 %v1432_v36, %v4917_v16  ;;  %v1439_v60 = vsel %vm513_vm1, %v1435_v57, -inf }
 0x597   :  { %v1436_v38 = vsel %vm513_vm1, %v1434_v37, -inf }
 0x59f   :  { %1179 = vrot.lane.b32.xlu1 %v4868_v58, %s4663_s2 }
 0x5c3   :  { %1437 = vmax.xlane.f32.xlu1 %v1436_v38 }
 0x617   :  { %v1160_v39 = vpop.xlane.xlu1 %1159 }
 0x618   :  { %v1162_v40 = vsub.f32 %v1154_v30, %v1160_v39  ;;  %v511_v30 = vld [vmem:[%s5418_s9 + $0x30] sm:$0xff] }
 0x619   :  { %v1157_v41 = vpop.xlane.xlu0 %1156 }
 0x61a   :  { %v1165_v42 = vmul.f32 1.442695, %v1162_v40  ;;  %v1161_v43 = vsub.f32 %v1153_v32, %v1157_v41 }
 0x61b   :  { %v1180_v48 = vpop.permute.xlu1 %1179 }
 0x61c   :  { %4567 = vpow2.f32 %v1165_v42  ;;  %v1163_v44 = vmul.f32 1.442695, %v1161_v43 }
 0x61e   :  { %4569 = vpow2.f32 %v1163_v44 }
 0x629   :  { %v4568_v45 = vpop.eup %4567 }
 0x62a   :  { %v1170_v46 = vsel %vm513_vm1, %v4568_v45, 0.0 }
 0x62b   :  { %v4570_v58 = vpop.eup %4569  ;;  %1171 = vadd.xlane.f32.xlu0 %v1170_v46 }
 0x62c   :  { %v1167_v47 = vsel %vm513_vm1, %v4570_v58, 0.0 }
 0x62f   :  { %1168 = vadd.xlane.f32.xlu0 %v1167_v47  ;;  %v1737_v47 = vld [vmem:[%s5420_s11 + $0x10] sm:$0xff] }
 0x645   :  { %1181 = vrot.lane.b32.xlu0 %v4858_v53, %s4663_s2 }
 0x64c   :  { %v1438_v49 = vpop.xlane.xlu1 %1437 }
 0x64d   :  { %v1442_v51 = vsub.f32 %v1434_v37, %v1438_v49  ;;  %v1736_v49 = vld [vmem:[%s5420_s11 + $0x8] sm:$0xff] }
 0x64f   :  { %v1444_v55 = vmul.f32 1.442695, %v1442_v51  ;;  %v1650_v51 = vld [vmem:[%s5419_s10] sm:$0xff] }
 0x651   :  { %4571 = vpow2.f32 %v1444_v55  ;;  %v1735_v55 = vld [vmem:[%s5420_s11] sm:$0xff] }
 0x65e   :  { %v4572_v62 = vpop.eup %4571 }
 0x65f   :  { %v1448_v63 = vsel %vm513_vm1, %v4572_v62, 0.0 }
 0x664   :  { %1440 = vmax.xlane.f32.xlu0 %v1439_v60 }
 0x668   :  { %1449 = vadd.xlane.f32.xlu0 %v1448_v63 }
 0x6b4   :  { %v1172_v0 = vpop.xlane.xlu0 %1171 }
 0x6b5   :  { %4573 = vrcp.f32 %v1172_v0 }
 0x6b8   :  { %v1169_v61 = vpop.xlane.xlu0 %1168 }
 0x6b9   :  { %4575 = vrcp.f32 %v1169_v61  ;;  %v1624_v61 = vld [vmem:[%s5423_s14] sm:$0x1] }
 0x6bc   :  { %v1182_v53 = vpop.permute.xlu0 %1181 }
 0x6bd   :  { %4285 = vmatprep.subr.mxu1 %v1182_v53 }
 0x6be   :  { %4286 = vmatpush3.msra.mxu1 %v1182_v53 }
 0x6bf   :  { %4287 = vmatprep.subr.mxu1 %v1180_v48 }
 0x6c0   :  { %4288 = vmatpush3.msra.mxu1 %v1180_v48 }
 0x6c1   :  { %4292 = vmatprep.subr.mxu1 %v510_v1 }
 0x6c2   :  { %v4574_v4 = vpop.eup %4573 }
 0x6c3   :  { %v1176_v7 = vmul.f32 %v4574_v4, %v4568_v45 }
 0x6c6   :  { %v4576_v5 = vpop.eup %4575 }
 0x6c7   :  { %v1175_v6 = vmul.f32 %v4576_v5, %v4570_v58  ;;  %v1652_v58 = vld [vmem:[%s5419_s10 + $0x10] sm:$0xff] }
 0x6c9   :  { %4289 = vmatprep.mubr.msk.f32.mxu1 %vm513_vm1, %v1175_v6 }
 0x6ca   :  { %4290 = vmatmul.mubr.msk.f32.vlgmr.msra.gmra.mxu1 %vm513_vm1, %v1176_v7 }
 0x6cb   :  { %4293 = vmatpush3.msra.mxu1 %v510_v1 }
 0x6cc   :  { %4294 = vmatprep.subr.mxu1 %v509_v8 }
 0x6cd   :  { %4295 = vmatpush3.msra.mxu1 %v509_v8 }
 0x6ce   :  { %4306 = vmatprep.subr.mxu1 %v1182_v53 }
 0x6ed   :  { %v1441_v9 = vpop.xlane.xlu0 %1440 }
 0x6ee   :  { %v1443_v10 = vsub.f32 %v1435_v57, %v1441_v9 }
 0x6f0   :  { %v1446_v11 = vmul.f32 1.442695, %v1443_v10  ;;  %v1841_v10 = vld [vmem:[%s5421_s12 + $0x38] sm:$0xff] }
 0x6f1   :  { %v1450_v15 = vpop.xlane.xlu0 %1449 }
 0x6f2   :  { %4577 = vpow2.f32 %v1446_v11  ;;  %v1840_v11 = vld [vmem:[%s5421_s12 + $0x30] sm:$0xff] }
 0x6f3   :  { %4579 = vrcp.f32 %v1450_v15  ;;  %v1837_v15 = vld [vmem:[%s5421_s12 + $0x18] sm:$0xff] }
 0x6ff   :  { %v4578_v12 = vpop.eup %4577 }
 0x700   :  { %v1451_v14 = vsel %vm513_vm1, %v4578_v12, 0.0  ;;  %v4580_v19 = vpop.eup %4579 }
 0x701   :  { %1452 = vadd.xlane.f32.xlu1 %v1451_v14  ;;  %v1456_v25 = vmul.f32 %v4580_v19, %v4572_v62  ;;  %v1838_v14 = vld [vmem:[%s5421_s12 + $0x20] sm:$0xff] }
 0x702   :  { %v1834_v19 = vld [vmem:[%s5421_s12] sm:$0xff] }
 0x78a   :  { %v4291_v20 = vpop.f32.mrf.mxu1  ;;  %v1453_v21 = vpop.xlane.xlu1 %1452 }
 0x78b   :  { %4581 = vrcp.f32 %v1453_v21 }
 0x78c   :  { %v1257_v22 = vpop.f32.mrf.mxu1 }
 0x78d   :  { %4296 = vmatprep.mubr.msk.f32.mxu1 %vm513_vm1, %v1257_v22 }
 0x78e   :  { %4297 = vmatmul.mubr.msk.f32.vlgmr.msra.gmra.mxu1 %vm513_vm1, %v4291_v20 }
 0x78f   :  { %4307 = vmatpush3.msra.mxu1 %v1182_v53  ;;  %4310 = vmatprep.mubr.msk.f32.mxu1 %vm513_vm1, %v1456_v25  ;;  %v1641_v53 = vadd.f32 1.0, %v1624_v61  ;;  %v3897_v61 = vld [vmem:[%s5414_s5 + $0x38] sm:$0xff] }
 0x790   :  { %4308 = vmatprep.subr.mxu1 %v1180_v48 }
 0x791   :  { %4309 = vmatpush3.msra.mxu1 %v1180_v48  ;;  %v1651_v48 = vld [vmem:[%s5419_s10 + $0x8] sm:$0xff]  ;;  %v1646_v6 = vrot.slane %v1641_v53, %v4803_v28  ;;  %v3915_v53 = vld [vmem:[%s5417_s8 + $0x38] sm:$0xff] }
 0x792   :  { %4313 = vmatprep.subr.mxu1 %v512_v29 }
 0x798   :  { %v4582_v26 = vpop.eup %4581 }
 0x799   :  { %v1457_v27 = vmul.f32 %v4582_v26, %v4578_v12  ;;  %v1839_v12 = vld [vmem:[%s5421_s12 + $0x28] sm:$0xff] }
 0x79b   :  { %4311 = vmatmul.mubr.msk.f32.vlgmr.msra.gmra.mxu1 %vm513_vm1, %v1457_v27 }
 0x79c   :  { %4314 = vmatpush3.msra.mxu1 %v512_v29 }
 0x79d   :  { %4315 = vmatprep.subr.mxu1 %v511_v30 }
 0x79e   :  { %4316 = vmatpush3.msra.mxu1 %v511_v30 }
 0x84e   :  { %v4298_v32 = vpop.f32.mrf.mxu1 }
 0x84f   :  { %v1348_v34 = vadd.f32 %v4298_v32, %v1057_v31 }
 0x850   :  { %v1338_v35 = vpop.f32.mrf.mxu1 }
 0x851   :  { %v1347_v36 = vadd.f32 %v1338_v35, %v1052_v33 }
 0x85b   :  { %v4312_v37 = vpop.f32.mrf.mxu1 }
 0x85d   :  { %v1530_v38 = vpop.f32.mrf.mxu1 }
 0x85e   :  { %4317 = vmatprep.mubr.msk.f32.mxu1 %vm513_vm1, %v1530_v38 }
 0x85f   :  { %4318 = vmatmul.mubr.msk.f32.vlgmr.msra.gmra.mxu1 %vm513_vm1, %v4312_v37 }
 0x91f   :  { %v4319_v39 = vpop.f32.mrf.mxu1 }
 0x920   :  { %v1621_v40 = vadd.f32 %v4319_v39, %v1348_v34 }
 0x921   :  { %v1611_v41 = vpop.f32.mrf.mxu1 }
 0x922   :  { %v5018_v42 = vadd.f32 %v1621_v40, %v4762_v3  ;;  %v1620_v43 = vadd.f32 %v1611_v41, %v1347_v36  ;;  %v1653_v3 = vld [vmem:[%s5419_s10 + $0x18] sm:$0xff] }
 0x923   :  { %4320 = vmatprep.subr.mxu0 %v1653_v3 }
 0x924   :  { %v5021_v23 = vadd.f32 %v1620_v43, %v4760_v2  ;;  %v1626_v24 = vmul.f32 %v5018_v42, %v5018_v42  ;;  %v1738_v2 = vld [vmem:[%s5420_s11 + $0x18] sm:$0xff]  ;;  %4321 = vmatpush3.msra.mxu0 %v1653_v3 }
 0x925   :  { %4331 = vmatprep.subr.mxu1 %v1738_v2  ;;  %4322 = vmatprep.subr.mxu0 %v1652_v58 }
 0x926   :  { %v1630_v44 = vsel %vm67_vm0, %v1626_v24, 0.0  ;;  %v1625_v45 = vmul.f32 %v5021_v23, %v5021_v23  ;;  %4332 = vmatpush3.msra.mxu1 %v1738_v2  ;;  %4323 = vmatpush3.msra.mxu0 %v1652_v58 }
 0x927   :  { %1631 = vadd.xlane.f32.xlu1 %v1630_v44  ;;  %4333 = vmatprep.subr.mxu1 %v1737_v47 }
 0x928   :  { %v1627_v46 = vsel %vm67_vm0, %v1625_v45, 0.0  ;;  %4334 = vmatpush3.msra.mxu1 %v1737_v47  ;;  %4324 = vmatprep.subr.mxu0 %v1651_v48 }
 0x929   :  { %1628 = vadd.xlane.f32.xlu0 %v1627_v46  ;;  %4335 = vmatprep.subr.mxu1 %v1736_v49 }
 0x92a   :  { %4325 = vmatpush3.msra.mxu0 %v1651_v48  ;;  %4336 = vmatpush3.msra.mxu1 %v1736_v49 }
 0x92b   :  { %4326 = vmatprep.subr.mxu0 %v1650_v51  ;;  %4337 = vmatprep.subr.mxu1 %v1735_v55 }
 0x92c   :  { %4327 = vmatpush3.msra.mxu0 %v1650_v51  ;;  %4338 = vmatpush3.msra.mxu1 %v1735_v55 }
 0x92d   :  { %4342 = vmatprep.subr.mxu0 %v1841_v10 }
 0x9b0   :  { %v1632_v56 = vpop.xlane.xlu1 %1631 }
 0x9b1   :  { %v1634_v57 = vmul.f32 0.03125, %v1632_v56  ;;  %v3890_v56 = vld [vmem:[%s5413_s4 + $0x30] sm:$0xff] }
 0x9b2   :  { %v1629_v60 = vpop.xlane.xlu0 %1628 }
 0x9b3   :  { %v1636_v62 = vadd.f32 1e-06, %v1634_v57  ;;  %v1633_v63 = vmul.f32 0.03125, %v1629_v60  ;;  %v3902_v57 = vld [vmem:[%s5415_s6 + $0x30] sm:$0xff]  ;;  %v3889_v60 = vld [vmem:[%s5413_s4 + $0x28] sm:$0xff] }
 0x9b5   :  { %4583 = vrsqrt.f32 %v1636_v62  ;;  %v1635_v0 = vadd.f32 1e-06, %v1633_v63  ;;  %v3901_v62 = vld [vmem:[%s5415_s6 + $0x28] sm:$0xff]  ;;  %v3888_v63 = vld [vmem:[%s5413_s4 + $0x20] sm:$0xff] }
 0x9b7   :  { %4585 = vrsqrt.f32 %v1635_v0  ;;  %v3900_v0 = vld [vmem:[%s5415_s6 + $0x20] sm:$0xff] }
 0x9c2   :  { %v4584_v1 = vpop.eup %4583 }
 0x9c3   :  { %v1640_v5 = vmul.f32 %v4584_v1, %v5018_v42 }
 0x9c4   :  { %v4586_v4 = vpop.eup %4585 }
 0x9c5   :  { %v1639_v7 = vmul.f32 %v4586_v4, %v5021_v23  ;;  %v1649_v9 = vmul.f32 %v1646_v6, %v1640_v5 }
 0x9c7   :  { %v1648_v8 = vmul.f32 %v1646_v6, %v1639_v7 }
 0x9c9   :  { %4328 = vmatprep.mubr.msk.f32.mxu0 %vm67_vm0, %v1648_v8  ;;  %4339 = vmatprep.mubr.msk.f32.mxu1 %vm67_vm0, %v1648_v8 }
 0x9ca   :  { %4329 = vmatmul.mubr.msk.f32.vlgmr.msra.gmra.mxu0 %vm67_vm0, %v1649_v9  ;;  %4340 = vmatmul.mubr.msk.f32.vlgmr.msra.gmra.mxu1 %vm67_vm0, %v1649_v9  ;;  %v3887_v9 = vld [vmem:[%s5422_s13 + $0x1] sm:$0x1] }
 0x9cb   :  { %4343 = vmatpush3.msra.mxu0 %v1841_v10  ;;  %v1944_v10 = vadd.f32 1.0, %v3887_v9 }
 0x9cc   :  { %4344 = vmatprep.subr.mxu0 %v1840_v11 }
 0x9cd   :  { %4345 = vmatpush3.msra.mxu0 %v1840_v11 }
 0x9ce   :  { %4346 = vmatprep.subr.mxu0 %v1839_v12 }
 0x9cf   :  { %4347 = vmatpush3.msra.mxu0 %v1839_v12 }
 0x9d0   :  { %4348 = vmatprep.subr.mxu0 %v1838_v14 }
 0x9d1   :  { %4349 = vmatpush3.msra.mxu0 %v1838_v14  ;;  %v1949_v14 = vrot.slane %v1944_v10, %v4803_v28 }
 0x9d2   :  { %4350 = vmatprep.subr.mxu0 %v1837_v15 }
 0x9d3   :  { %4351 = vmatpush3.msra.mxu0 %v1837_v15 }
 0x9d4   :  { %4352 = vmatprep.subr.mxu0 %v1836_v17 }
 0x9d5   :  { %4353 = vmatpush3.msra.mxu0 %v1836_v17 }
 0x9d6   :  { %4354 = vmatprep.subr.mxu0 %v1835_v18 }
 0x9d7   :  { %4355 = vmatpush3.msra.mxu0 %v1835_v18 }
 0x9d8   :  { %4356 = vmatprep.subr.mxu0 %v1834_v19 }
 0x9d9   :  { %4357 = vmatpush3.msra.mxu0 %v1834_v19 }
 0xa8a   :  { %v4330_v20 = vpop.f32.mrf.mxu0  ;;  %v4341_v40 = vpop.f32.mrf.mxu1 }
 0xa8b   :  { %v1815_v21 = vmul.f32 %v4330_v20, %v4330_v20 }
 0xa8c   :  { %v1726_v22 = vpop.f32.mrf.mxu0  ;;  %v1805_v44 = vpop.f32.mrf.mxu1 }
 0xa8d   :  { %v1817_v25 = vmul.f32 %v4330_v20, %v1815_v21  ;;  %v1814_v26 = vmul.f32 %v1726_v22, %v1726_v22  ;;  %v3914_v21 = vld [vmem:[%s5417_s8 + $0x30] sm:$0xff] }
 0xa8f   :  { %v1819_v27 = vmul.f32 0.044715, %v1817_v25  ;;  %v1816_v29 = vmul.f32 %v1814_v26, %v1726_v22  ;;  %v3913_v25 = vld [vmem:[%s5417_s8 + $0x28] sm:$0xff]  ;;  %v3894_v26 = vld [vmem:[%s5414_s5 + $0x20] sm:$0xff] }
 0xa91   :  { %v1821_v30 = vadd.f32 %v4330_v20, %v1819_v27  ;;  %v1818_v31 = vmul.f32 0.044715, %v1816_v29  ;;  %v3912_v27 = vld [vmem:[%s5417_s8 + $0x20] sm:$0xff]  ;;  %v3909_v29 = vld [vmem:[%s5416_s7 + $0x38] sm:$0xff] }
 0xa93   :  { %v1823_v32 = vmul.f32 0.7978846, %v1821_v30  ;;  %v1820_v33 = vadd.f32 %v1818_v31, %v1726_v22  ;;  %v3908_v30 = vld [vmem:[%s5416_s7 + $0x30] sm:$0xff]  ;;  %v3907_v31 = vld [vmem:[%s5416_s7 + $0x28] sm:$0xff] }
 0xa95   :  { %4587 = vtanh.f32 %v1823_v32  ;;  %v1822_v34 = vmul.f32 0.7978846, %v1820_v33  ;;  %v3906_v32 = vld [vmem:[%s5416_s7 + $0x20] sm:$0xff] }
 0xa97   :  { %4589 = vtanh.f32 %v1822_v34 }
 0xaa2   :  { %v4588_v35 = vpop.eup %4587 }
 0xaa3   :  { %v1827_v36 = vadd.f32 1.0, %v4588_v35 }
 0xaa4   :  { %v4590_v37 = vpop.eup %4589 }
 0xaa5   :  { %v1829_v38 = vmul.f32 0.5, %v1827_v36  ;;  %v1826_v39 = vadd.f32 1.0, %v4590_v37 }
 0xaa7   :  { %v1828_v41 = vmul.f32 0.5, %v1826_v39  ;;  %v1831_v43 = vmul.f32 %v4330_v20, %v1829_v38  ;;  %v3896_v20 = vld [vmem:[%s5414_s5 + $0x30] sm:$0xff] }
 0xaa9   :  { %v1830_v24 = vmul.f32 %v1828_v41, %v1726_v22  ;;  %v1833_v46 = vmul.f32 %v4341_v40, %v1831_v43  ;;  %v3895_v22 = vld [vmem:[%s5414_s5 + $0x28] sm:$0xff] }
 0xaab   :  { %v1832_v45 = vmul.f32 %v1830_v24, %v1805_v44 }
 0xaad   :  { %4358 = vmatprep.mubr.msk.f32.mxu0 %vm1842_vm2, %v1832_v45 }
 0xaae   :  { %4359 = vmatmul.mubr.msk.f32.vlgmr.msra.gmra.mxu0 %vm1842_vm2, %v1833_v46 }
 0xb6e   :  { %v4360_v3 = vpop.f32.mrf.mxu0 }
 0xb6f   :  { %v5090_v2 = vadd.f32 %v4360_v3, %v5018_v42  ;;  %v3891_v42 = vld [vmem:[%s5413_s4 + $0x38] sm:$0xff] }
 0xb70   :  { %v1915_v58 = vpop.f32.mrf.mxu0  ;;  %4361 = vmatprep.subr.mxu1 %v3891_v42 }
 0xb71   :  { %v5093_v47 = vadd.f32 %v1915_v58, %v5021_v23  ;;  %v1929_v48 = vmul.f32 %v5090_v2, %v5090_v2  ;;  %v3903_v23 = vld [vmem:[%s5415_s6 + $0x38] sm:$0xff]  ;;  %4362 = vmatpush3.msra.mxu1 %v3891_v42 }
 0xb72   :  { %4383 = vmatprep.subr.mxu0 %v3903_v23  ;;  %4363 = vmatprep.subr.mxu1 %v3890_v56 }
 0xb73   :  { %v1933_v49 = vsel %vm67_vm0, %v1929_v48, 0.0  ;;  %v1928_v51 = vmul.f32 %v5093_v47, %v5093_v47  ;;  %4384 = vmatpush3.msra.mxu0 %v3903_v23  ;;  %4364 = vmatpush3.msra.mxu1 %v3890_v56 }
 0xb74   :  { %1934 = vadd.xlane.f32.xlu1 %v1933_v49  ;;  %4385 = vmatprep.subr.mxu0 %v3902_v57 }
 0xb75   :  { %v1930_v55 = vsel %vm67_vm0, %v1928_v51, 0.0  ;;  %4386 = vmatpush3.msra.mxu0 %v3902_v57  ;;  %4365 = vmatprep.subr.mxu1 %v3889_v60 }
 0xb76   :  { %1931 = vadd.xlane.f32.xlu0 %v1930_v55  ;;  %4387 = vmatprep.subr.mxu0 %v3901_v62 }
 0xb77   :  { %4366 = vmatpush3.msra.mxu1 %v3889_v60  ;;  %4388 = vmatpush3.msra.mxu0 %v3901_v62 }
 0xb78   :  { %4367 = vmatprep.subr.mxu1 %v3888_v63  ;;  %4389 = vmatprep.subr.mxu0 %v3900_v0 }
 0xb79   :  { %4368 = vmatpush3.msra.mxu1 %v3888_v63  ;;  %4390 = vmatpush3.msra.mxu0 %v3900_v0 }
 0xb7a   :  { %4372 = vmatprep.subr.mxu1 %v3897_v61  ;;  %4405 = vmatprep.subr.mxu0 %v3915_v53 }
 0xbfd   :  { %v1935_v1 = vpop.xlane.xlu1 %1934 }
 0xbfe   :  { %v1937_v4 = vmul.f32 0.03125, %v1935_v1 }
 0xbff   :  { %v1932_v5 = vpop.xlane.xlu0 %1931 }
 0xc00   :  { %v1939_v6 = vadd.f32 1e-06, %v1937_v4  ;;  %v1936_v7 = vmul.f32 0.03125, %v1932_v5 }
 0xc02   :  { %4591 = vrsqrt.f32 %v1939_v6  ;;  %v1938_v8 = vadd.f32 1e-06, %v1936_v7 }
 0xc04   :  { %4593 = vrsqrt.f32 %v1938_v8 }
 0xc0f   :  { %v4592_v11 = vpop.eup %4591 }
 0xc10   :  { %v1943_v15 = vmul.f32 %v4592_v11, %v5090_v2 }
 0xc11   :  { %v4594_v12 = vpop.eup %4593 }
 0xc12   :  { %v1942_v17 = vmul.f32 %v4594_v12, %v5093_v47  ;;  %v1952_v19 = vmul.f32 %v1949_v14, %v1943_v15 }
 0xc14   :  { %v1951_v18 = vmul.f32 %v1949_v14, %v1942_v17 }
 0xc16   :  { %4369 = vmatprep.mubr.msk.f32.mxu1 %vm67_vm0, %v1951_v18  ;;  %4391 = vmatprep.mubr.msk.f32.mxu0 %vm67_vm0, %v1951_v18 }
 0xc17   :  { %4370 = vmatmul.mubr.msk.f32.vlgmr.msra.gmra.mxu1 %vm67_vm0, %v1952_v19  ;;  %4392 = vmatmul.mubr.msk.f32.vlgmr.msra.gmra.mxu0 %vm67_vm0, %v1952_v19 }
 0xc18   :  { %4373 = vmatpush3.msra.mxu1 %v3897_v61  ;;  %4406 = vmatpush3.msra.mxu0 %v3915_v53 }
 0xc19   :  { %4374 = vmatprep.subr.mxu1 %v3896_v20  ;;  %4380 = vmatprep.mubr.msk.f32.mxu1 %vm67_vm0, %v1951_v18 }
 0xc1a   :  { %4407 = vmatprep.subr.mxu0 %v3914_v21  ;;  %4413 = vmatprep.mubr.msk.f32.mxu0 %vm67_vm0, %v1951_v18 }
 0xc1b   :  { %4375 = vmatpush3.msra.mxu1 %v3896_v20  ;;  %4408 = vmatpush3.msra.mxu0 %v3914_v21 }
 0xc1c   :  { %4376 = vmatprep.subr.mxu1 %v3895_v22  ;;  %4409 = vmatprep.subr.mxu0 %v3913_v25 }
 0xc1d   :  { %4377 = vmatpush3.msra.mxu1 %v3895_v22  ;;  %4410 = vmatpush3.msra.mxu0 %v3913_v25 }
 0xc1e   :  { %4378 = vmatprep.subr.mxu1 %v3894_v26  ;;  %4411 = vmatprep.subr.mxu0 %v3912_v27 }
 0xc1f   :  { %4379 = vmatpush3.msra.mxu1 %v3894_v26  ;;  %4412 = vmatpush3.msra.mxu0 %v3912_v27 }
 0xc20   :  { %4381 = vmatmul.mubr.msk.f32.vlgmr.msra.gmra.mxu1 %vm67_vm0, %v1952_v19  ;;  %4394 = vmatprep.subr.mxu1 %v3909_v29 }
 0xc21   :  { %4414 = vmatmul.mubr.msk.f32.vlgmr.msra.gmra.mxu0 %vm67_vm0, %v1952_v19  ;;  %4395 = vmatpush3.msra.mxu1 %v3909_v29 }
 0xc22   :  { %4402 = vmatprep.mubr.msk.f32.mxu1 %vm67_vm0, %v1951_v18  ;;  %4396 = vmatprep.subr.mxu1 %v3908_v30 }
 0xc23   :  { %4397 = vmatpush3.msra.mxu1 %v3908_v30 }
 0xc24   :  { %4398 = vmatprep.subr.mxu1 %v3907_v31 }
 0xc25   :  { %4399 = vmatpush3.msra.mxu1 %v3907_v31 }
 0xc26   :  { %4400 = vmatprep.subr.mxu1 %v3906_v32 }
 0xc27   :  { %4401 = vmatpush3.msra.mxu1 %v3906_v32 }
 0xc28   :  { %4403 = vmatmul.mubr.msk.f32.vlgmr.msra.gmra.mxu1 %vm67_vm0, %v1952_v19 }
 0xcd7   :  { %v4371_v33 = vpop.f32.mrf.mxu1  ;;  %v4393_v34 = vpop.f32.mrf.mxu0 }
 0xcd8   :  { %v2040_v38 = vmul.f32 %v4371_v33, %v4874_v59  ;;  %v2206_v58 = vmul.f32 %v4393_v34, %v4874_v59 }
 0xcd9   :  { %v2030_v35 = vpop.f32.mrf.mxu1  ;;  %v2196_v36 = vpop.f32.mrf.mxu0 }
 0xcda   :  { %v2039_v43 = vmul.f32 %v2030_v35, %v4851_v50  ;;  %v2205_v51 = vmul.f32 %v2196_v36, %v4851_v50 }
 0xce0   :  { %v4382_v37 = vpop.f32.mrf.mxu1 }
 0xce1   :  { %v2122_v39 = vmul.f32 %v4382_v37, %v4863_v54  ;;  %v5179_v40 = vpop.f32.mrf.mxu0 }
 0xce2   :  { %4423 = vmatprep.subr.mxu0 %v5179_v40  ;;  %v2112_v41 = vpop.f32.mrf.mxu1 }
 0xce3   :  { %v5183_v24 = vadd.f32 %v2122_v39, %v2040_v38  ;;  %v2121_v44 = vmul.f32 %v2112_v41, %v4856_v52  ;;  %v5186_v45 = vpop.f32.mrf.mxu0  ;;  %4424 = vmatpush3.msra.mxu0 %v5179_v40  ;;  %v3921_v38 = vld [vmem:[%s5418_s9 + $0x58] sm:$0xff]  ;;  %v3919_v39 = vld [vmem:[%s5418_s9 + $0x48] sm:$0xff]  ;;  %v3918_v41 = vld [vmem:[%s5418_s9 + $0x40] sm:$0xff] }
 0xce4   :  { %4425 = vmatprep.subr.mxu0 %v5186_v45 }
 0xce5   :  { %v5190_v46 = vadd.f32 %v2121_v44, %v2039_v43  ;;  %4426 = vmatpush3.msra.mxu0 %v5186_v45  ;;  %2576 = vrot.lane.b32.xlu1 %v5183_v24, %s4663_s2 }
 0xce6   :  { %4437 = vmatprep.subr.mxu0 %v5179_v40 }
 0xce7   :  { %2574 = vrot.lane.b32.xlu0 %v5190_v46, %s4663_s2  ;;  %4420 = vmatprep.mubr.msk.f32.mxu1 %vm513_vm1, %v5190_v46 }
 0xce8   :  { %v4404_v3 = vpop.f32.mrf.mxu1 }
 0xce9   :  { %v2288_v48 = vmul.f32 %v4404_v3, %v4863_v54 }
 0xcea   :  { %v2278_v49 = vpop.f32.mrf.mxu1 }
 0xceb   :  { %v5203_v55 = vadd.f32 %v2288_v48, %v2206_v58  ;;  %v2287_v42 = vmul.f32 %v2278_v49, %v4856_v52  ;;  %v3920_v48 = vld [vmem:[%s5418_s9 + $0x50] sm:$0xff] }
 0xced   :  { %v2289_v23 = vadd.f32 %v2287_v42, %v2205_v51  ;;  %4416 = vmatprep.subr.msk.mxu1 %vm513_vm1, %v5203_v55 }
 0xcee   :  { %4417 = vmatpush3.xpose.msk.msra.mxu1 %vm513_vm1, %v5203_v55 }
 0xcef   :  { %4418 = vmatprep.subr.msk.mxu1 %vm513_vm1, %v2289_v23 }
 0xcf2   :  { %4419 = vmatpush3.xpose.msk.msra.mxu1 %vm513_vm1, %v2289_v23 }
 0xcf3   :  { %4430 = vmatprep.subr.msk.mxu1 %vm513_vm1, %v5203_v55 }
 0xcf5   :  { %4421 = vmatmul.mubr.msk.f32.vlgmr.msra.gmra.mxu1 %vm513_vm1, %v5183_v24 }
 0xcf6   :  { %4431 = vmatpush3.xpose.msk.msra.mxu1 %vm513_vm1, %v5203_v55 }
 0xcf7   :  { %4432 = vmatprep.subr.msk.mxu1 %vm513_vm1, %v2289_v23 }
 0xcfa   :  { %4433 = vmatpush3.xpose.msk.msra.mxu1 %vm513_vm1, %v2289_v23 }
 0xcfb   :  { %4451 = vmatprep.subr.mxu1 %v3919_v39 }
 0xd57   :  { %v2577_v52 = vpop.permute.xlu1 %2576 }
 0xd59   :  { %v2575_v50 = vpop.permute.xlu0 %2574 }
 0xd5a   :  { %4434 = vmatprep.mubr.msk.f32.mxu1 %vm513_vm1, %v2575_v50 }
 0xd5b   :  { %4435 = vmatmul.mubr.msk.f32.vlgmr.msra.gmra.mxu1 %vm513_vm1, %v2577_v52 }
 0xd5c   :  { %4452 = vmatpush3.msra.mxu1 %v3919_v39 }
 0xd5d   :  { %4453 = vmatprep.subr.mxu1 %v3918_v41 }
 0xd5e   :  { %4454 = vmatpush3.msra.mxu1 %v3918_v41 }
 0xdb5   :  { %v4422_v54 = vpop.f32.mrf.mxu1 }
 0xdb6   :  { %v2468_v59 = vmul.f32 0.25, %v4422_v54 }
 0xdb7   :  { %v2458_v56 = vpop.f32.mrf.mxu1 }
 0xdb8   :  { %v2467_v57 = vmul.f32 0.25, %v2458_v56  ;;  %v2470_v60 = vadd.f32 %v2468_v59, %v4912_v13 }
 0xdba   :  { %v2474_v62 = vsel %vm513_vm1, %v2470_v60, -inf  ;;  %v2469_v63 = vadd.f32 %v2467_v57, %v4917_v16 }
 0xdbb   :  { %2475 = vmax.xlane.f32.xlu0 %v2474_v62 }
 0xdbc   :  { %v2471_v0 = vsel %vm513_vm1, %v2469_v63, -inf }
 0xdbd   :  { %2472 = vmax.xlane.f32.xlu1 %v2471_v0 }
 0xe1b   :  { %v4436_v61 = vpop.f32.mrf.mxu1 }
 0xe1c   :  { %v2658_v53 = vmul.f32 0.25, %v4436_v61 }
 0xe1d   :  { %v2648_v1 = vpop.f32.mrf.mxu1 }
 0xe1e   :  { %v2657_v4 = vmul.f32 0.25, %v2648_v1  ;;  %v2660_v5 = vadd.f32 %v2658_v53, %v4912_v13  ;;  %v4639_v53 = vld [vmem:[%s5412_s3 + $0x8] sm:$0xff] }
 0xe20   :  { %v2664_v6 = vsel %vm513_vm1, %v2660_v5, -inf  ;;  %v2659_v7 = vadd.f32 %v2657_v4, %v4917_v16 }
 0xe21   :  { %2665 = vmax.xlane.f32.xlu1 %v2664_v6 }
 0xe22   :  { %v2661_v8 = vsel %vm513_vm1, %v2659_v7, -inf }
 0xe23   :  { %2662 = vmax.xlane.f32.xlu0 %v2661_v8 }
 0xe44   :  { %v2476_v9 = vpop.xlane.xlu0 %2475 }
 0xe45   :  { %v2478_v10 = vsub.f32 %v2470_v60, %v2476_v9 }
 0xe46   :  { %v2473_v11 = vpop.xlane.xlu1 %2472 }
 0xe47   :  { %v2481_v12 = vmul.f32 1.442695, %v2478_v10  ;;  %v2477_v14 = vsub.f32 %v2469_v63, %v2473_v11 }
 0xe49   :  { %4595 = vpow2.f32 %v2481_v12  ;;  %v2479_v15 = vmul.f32 1.442695, %v2477_v14 }
 0xe4b   :  { %4597 = vpow2.f32 %v2479_v15 }
 0xe56   :  { %v4596_v17 = vpop.eup %4595 }
 0xe57   :  { %v2486_v18 = vsel %vm513_vm1, %v4596_v17, 0.0 }
 0xe58   :  { %v4598_v13 = vpop.eup %4597  ;;  %2487 = vadd.xlane.f32.xlu1 %v2486_v18 }
 0xe59   :  { %v2483_v19 = vsel %vm513_vm1, %v4598_v13, 0.0 }
 0xe5a   :  { %2484 = vadd.xlane.f32.xlu0 %v2483_v19 }
 0xeaa   :  { %v2666_v16 = vpop.xlane.xlu1 %2665 }
 0xeab   :  { %v2668_v20 = vsub.f32 %v2660_v5, %v2666_v16  ;;  %v4640_v5 = vld [vmem:[%s5412_s3] sm:$0xff] }
 0xeac   :  { %v2663_v21 = vpop.xlane.xlu0 %2662 }
 0xead   :  { %v2671_v22 = vmul.f32 1.442695, %v2668_v20  ;;  %v2667_v25 = vsub.f32 %v2659_v7, %v2663_v21 }
 0xeaf   :  { %4599 = vpow2.f32 %v2671_v22  ;;  %v2669_v26 = vmul.f32 1.442695, %v2667_v25 }
 0xeb1   :  { %4601 = vpow2.f32 %v2669_v26 }
 0xebc   :  { %v4600_v27 = vpop.eup %4599 }
 0xebd   :  { %v2676_v29 = vsel %vm513_vm1, %v4600_v27, 0.0 }
 0xebe   :  { %v4602_v30 = vpop.eup %4601  ;;  %2677 = vadd.xlane.f32.xlu1 %v2676_v29 }
 0xebf   :  { %v2673_v31 = vsel %vm513_vm1, %v4602_v30, 0.0 }
 0xec0   :  { %2674 = vadd.xlane.f32.xlu0 %v2673_v31 }
 0xecf   :  { %2930 = vrot.lane.b32.xlu1 %v2289_v23, %s4663_s2 }
 0xed3   :  { %2926 = vrot.lane.b32.xlu1 %v5190_v46, %s4664_s19 }
 0xed6   :  { %2932 = vrot.lane.b32.xlu0 %v5203_v55, %s4663_s2 }
 0xed7   :  { %2928 = vrot.lane.b32.xlu1 %v5183_v24, %s4664_s19 }
 0xeda   :  { %3215 = vrot.lane.b32.xlu0 %v5190_v46, %s4665_s20 }
 0xedb   :  { %3217 = vrot.lane.b32.xlu1 %v5183_v24, %s4665_s20  ;;  %s4666_s20 = smov [#allocation2]  }
 0xedc   :  { %s3828_s22 = sshll.u32 %s4666_s20, 4  ;;  %s3829_s22 = int_to_ptr.vmem [resolvable:$true] %s3828_s22 }
 0xedd   :  { %s4641_s13 = scalar_lea.vmem %s3829_s22, 256  ;;  %p4646_p1 = scmp.lt.s32.totalorder %s3829_s22, %s3829_s22 }
 0xede   :  { %p4642_p0 = scmp.ne.s32.totalorder %s3829_s22, %s4641_s13  ;;  %p4647_p2 = scmp.lt.s32.totalorder %s4641_s13, %s4641_s13 }
 0xee0   :  { %p4648_p3 = por %p4647_p2, %p4646_p1 }
 0xee1   :  { %v2488_v32 = vpop.xlane.xlu1 %2487 }
 0xee2   :  { %4603 = vrcp.f32 %v2488_v32  ;;  %p4649_p4 = pnand %p4648_p3, %p4642_p0 }
 0xee3   :  { %v2485_v33 = vpop.xlane.xlu0 %2484 }
 0xee4   :  { %4605 = vrcp.f32 %v2485_v33 }
 0xeef   :  { %v4604_v34 = vpop.eup %4603 }
 0xef0   :  { %v2492_v37 = vmul.f32 %v4604_v34, %v4596_v17 }
 0xef1   :  { %v4606_v35 = vpop.eup %4605 }
 0xef2   :  { %v2491_v36 = vmul.f32 %v4606_v35, %v4598_v13 }
 0xef4   :  { %4427 = vmatprep.mubr.msk.f32.mxu0 %vm513_vm1, %v2491_v36 }
 0xef5   :  { %4428 = vmatmul.mubr.msk.f32.vlgmr.msra.gmra.mxu0 %vm513_vm1, %v2492_v37 }
 0xef6   :  { %4438 = vmatpush3.msra.mxu0 %v5179_v40 }
 0xef7   :  { %4439 = vmatprep.subr.mxu0 %v5186_v45 }
 0xef8   :  { %4440 = vmatpush3.msra.mxu0 %v5186_v45 }
 0xef9   :  { %4444 = vmatprep.subr.mxu0 %v3921_v38 }
 0xf47   :  { %v2678_v43 = vpop.xlane.xlu1 %2677 }
 0xf48   :  { %4607 = vrcp.f32 %v2678_v43  ;;  %v3922_v43 = vld [vmem:[%s5418_s9 + $0x60] sm:$0xff] }
 0xf49   :  { %v2675_v24 = vpop.xlane.xlu0 %2674 }
 0xf4a   :  { %4609 = vrcp.f32 %v2675_v24 }
 0xf4b   :  { %v2931_v42 = vpop.permute.xlu1 %2930 }
 0xf4d   :  { %v2933_v49 = vpop.permute.xlu0 %2932 }
 0xf4f   :  { %v2927_v52 = vpop.permute.xlu1 %2926 }
 0xf51   :  { %v3216_v59 = vpop.permute.xlu0 %3215 }
 0xf53   :  { %v2929_v54 = vpop.permute.xlu1 %2928 }
 0xf55   :  { %v4608_v44 = vpop.eup %4607 }
 0xf56   :  { %v2682_v58 = vmul.f32 %v4608_v44, %v4600_v27 }
 0xf57   :  { %v4610_v46 = vpop.eup %4609  ;;  %v3218_v56 = vpop.permute.xlu1 %3217 }
 0xf58   :  { %v2681_v3 = vmul.f32 %v4610_v46, %v4602_v30 }
 0xf5a   :  { %4441 = vmatprep.mubr.msk.f32.mxu0 %vm513_vm1, %v2681_v3 }
 0xf5b   :  { %4442 = vmatmul.mubr.msk.f32.vlgmr.msra.gmra.mxu0 %vm513_vm1, %v2682_v58 }
 0xf5c   :  { %4445 = vmatpush3.msra.mxu0 %v3921_v38 }
 0xf5d   :  { %4446 = vmatprep.subr.mxu0 %v3920_v48 }
 0xf5e   :  { %4447 = vmatpush3.msra.mxu0 %v3920_v48 }
 0xf5f   :  { %4458 = vmatprep.subr.msk.mxu0 %vm513_vm1, %v2933_v49 }
 0xfb5   :  { %v4429_v51 = vpop.f32.mrf.mxu0 }
 0xfb7   :  { %v2565_v55 = vpop.f32.mrf.mxu0 }
 0xfb8   :  { %4455 = vmatprep.mubr.msk.f32.mxu1 %vm513_vm1, %v2565_v55 }
 0xfb9   :  { %4456 = vmatmul.mubr.msk.f32.vlgmr.msra.gmra.mxu1 %vm513_vm1, %v4429_v51 }
0x101b   :  { %v4443_v23 = vpop.f32.mrf.mxu0 }
0x101d   :  { %v2755_v50 = vpop.f32.mrf.mxu0 }
0x101e   :  { %4448 = vmatprep.mubr.msk.f32.mxu0 %vm513_vm1, %v2755_v50 }
0x101f   :  { %4449 = vmatmul.mubr.msk.f32.vlgmr.msra.gmra.mxu0 %vm513_vm1, %v4443_v23 }
0x1020   :  { %4459 = vmatpush3.xpose.msk.msra.mxu0 %vm513_vm1, %v2933_v49  ;;  %4462 = vmatprep.mubr.msk.f32.mxu0 %vm513_vm1, %v2927_v52 }
0x1021   :  { %4460 = vmatprep.subr.msk.mxu0 %vm513_vm1, %v2931_v42 }
0x1024   :  { %4461 = vmatpush3.xpose.msk.msra.mxu0 %vm513_vm1, %v2931_v42 }
0x1025   :  { %4479 = vmatprep.subr.msk.mxu0 %vm513_vm1, %v2933_v49 }
0x1027   :  { %4463 = vmatmul.mubr.msk.f32.vlgmr.msra.gmra.mxu0 %vm513_vm1, %v2929_v54 }
0x1028   :  { %4480 = vmatpush3.xpose.msk.msra.mxu0 %vm513_vm1, %v2933_v49  ;;  %4483 = vmatprep.mubr.msk.f32.mxu0 %vm513_vm1, %v3216_v59 }
0x1029   :  { %4481 = vmatprep.subr.msk.mxu0 %vm513_vm1, %v2931_v42 }
0x102c   :  { %4482 = vmatpush3.xpose.msk.msra.mxu0 %vm513_vm1, %v2931_v42 }
0x102f   :  { %4484 = vmatmul.mubr.msk.f32.vlgmr.msra.gmra.mxu0 %vm513_vm1, %v3218_v56  ;;  %v3925_v56 = vld [vmem:[%s5418_s9 + $0x78] sm:$0xff] }
0x1079   :  { %v4457_v49 = vpop.f32.mrf.mxu1 }
0x107b   :  { %v2917_v51 = vpop.f32.mrf.mxu1 }
0x10df   :  { %v5280_v57 = vpop.f32.mrf.mxu0 }
0x10e1   :  { %v5282_v60 = vpop.f32.mrf.mxu0 }
0x10e7   :  { %v4464_v62 = vpop.f32.mrf.mxu0 }
0x10e8   :  { %v3018_v63 = vmul.f32 0.25, %v4464_v62  ;;  %v3924_v62 = vld [vmem:[%s5418_s9 + $0x70] sm:$0xff] }
0x10e9   :  { %v3008_v0 = vpop.f32.mrf.mxu0 }
0x10ea   :  { %v3017_v61 = vmul.f32 0.25, %v3008_v0  ;;  %v3020_v1 = vadd.f32 %v4639_v53, %v3018_v63  ;;  %v2923_v63 = vadd.f32 %v4457_v49, %v5280_v57 }
0x10ec   :  { %v3024_v4 = vsel %vm513_vm1, %v3020_v1, -inf  ;;  %v3019_v6 = vadd.f32 %v4640_v5, %v3017_v61  ;;  %v2918_v61 = vadd.f32 %v2917_v51, %v5282_v60 }
0x10ed   :  { %3025 = vmax.xlane.f32.xlu1 %v3024_v4 }
0x10ee   :  { %v3021_v7 = vsel %vm513_vm1, %v3019_v6, -inf }
0x10ef   :  { %3022 = vmax.xlane.f32.xlu0 %v3021_v7  ;;  %v4485_v8 = vpop.f32.mrf.mxu0 }
0x10f0   :  { %v3299_v29 = vmul.f32 0.25, %v4485_v8 }
0x10f1   :  { %v3289_v9 = vpop.f32.mrf.mxu0 }
0x10f2   :  { %v3298_v10 = vmul.f32 0.25, %v3289_v9  ;;  %v3301_v30 = vadd.f32 %v4639_v53, %v3299_v29  ;;  %v3958_v29 = vld [vmem:[%s5423_s14 + $0x1] sm:$0x1] }
0x10f4   :  { %v3300_v11 = vadd.f32 %v4640_v5, %v3298_v10  ;;  %v3305_v31 = vsel %vm513_vm1, %v3301_v30, -inf }
0x10f6   :  { %v3302_v12 = vsel %vm513_vm1, %v3300_v11, -inf }
0x10fe   :  { %3045 = vrot.lane.b32.xlu1 %v5186_v45, %s4663_s2 }
0x1122   :  { %3303 = vmax.xlane.f32.xlu1 %v3302_v12 }
0x1176   :  { %v3026_v14 = vpop.xlane.xlu1 %3025 }
0x1177   :  { %v3028_v15 = vsub.f32 %v3020_v1, %v3026_v14 }
0x1178   :  { %v3023_v17 = vpop.xlane.xlu0 %3022 }
0x1179   :  { %v3031_v18 = vmul.f32 1.442695, %v3028_v15  ;;  %v3027_v13 = vsub.f32 %v3019_v6, %v3023_v17  ;;  %v3961_v17 = vld [vmem:[%s5419_s10 + $0x30] sm:$0xff] }
0x117a   :  { %v3046_v22 = vpop.permute.xlu1 %3045 }
0x117b   :  { %4611 = vpow2.f32 %v3031_v18  ;;  %v3029_v19 = vmul.f32 1.442695, %v3027_v13  ;;  %v3967_v18 = vld [vmem:[%s5420_s11 + $0x30] sm:$0xff]  ;;  %v3960_v13 = vld [vmem:[%s5419_s10 + $0x28] sm:$0xff] }
0x117d   :  { %4613 = vpow2.f32 %v3029_v19  ;;  %v3966_v19 = vld [vmem:[%s5420_s11 + $0x28] sm:$0xff] }
0x1188   :  { %v4612_v16 = vpop.eup %4611 }
0x1189   :  { %v3036_v20 = vsel %vm513_vm1, %v4612_v16, 0.0 }
0x118a   :  { %v4614_v21 = vpop.eup %4613  ;;  %3037 = vadd.xlane.f32.xlu0 %v3036_v20  ;;  %v3965_v20 = vld [vmem:[%s5420_s11 + $0x20] sm:$0xff] }
0x118b   :  { %v3033_v45 = vsel %vm513_vm1, %v4614_v21, 0.0 }
0x118e   :  { %3034 = vadd.xlane.f32.xlu0 %v3033_v45 }
0x11a4   :  { %3047 = vrot.lane.b32.xlu0 %v5179_v40, %s4663_s2  ;;  %v3923_v40 = vld [vmem:[%s5418_s9 + $0x68] sm:$0xff] }
0x11ab   :  { %v3304_v25 = vpop.xlane.xlu1 %3303 }
0x11ac   :  { %v3308_v26 = vsub.f32 %v3300_v11, %v3304_v25 }
0x11ae   :  { %v3310_v27 = vmul.f32 1.442695, %v3308_v26 }
0x11b0   :  { %4615 = vpow2.f32 %v3310_v27 }
0x11bd   :  { %v4616_v32 = vpop.eup %4615 }
0x11be   :  { %v3314_v33 = vsel %vm513_vm1, %v4616_v32, 0.0 }
0x11c3   :  { %3306 = vmax.xlane.f32.xlu0 %v3305_v31 }
0x11c7   :  { %3315 = vadd.xlane.f32.xlu0 %v3314_v33 }
0x1213   :  { %v3038_v34 = vpop.xlane.xlu0 %3037 }
0x1214   :  { %4617 = vrcp.f32 %v3038_v34 }
0x1217   :  { %v3035_v35 = vpop.xlane.xlu0 %3034 }
0x1218   :  { %4619 = vrcp.f32 %v3035_v35 }
0x121b   :  { %v3048_v36 = vpop.permute.xlu0 %3047 }
0x121c   :  { %4465 = vmatprep.subr.mxu1 %v3048_v36 }
0x121d   :  { %4466 = vmatpush3.msra.mxu1 %v3048_v36 }
0x121e   :  { %4467 = vmatprep.subr.mxu1 %v3046_v22 }
0x121f   :  { %4468 = vmatpush3.msra.mxu1 %v3046_v22 }
0x1220   :  { %4472 = vmatprep.subr.mxu1 %v3923_v40 }
0x1221   :  { %v4618_v37 = vpop.eup %4617 }
0x1222   :  { %v3042_v41 = vmul.f32 %v4618_v37, %v4612_v16  ;;  %v3959_v16 = vld [vmem:[%s5419_s10 + $0x20] sm:$0xff]  ;;  %v3978_v37 = vld [vmem:[%s5421_s12 + $0x78] sm:$0xff] }
0x1225   :  { %v4620_v38 = vpop.eup %4619 }
0x1226   :  { %v3041_v39 = vmul.f32 %v4620_v38, %v4614_v21  ;;  %v3977_v38 = vld [vmem:[%s5421_s12 + $0x70] sm:$0xff] }
0x1228   :  { %4469 = vmatprep.mubr.msk.f32.mxu1 %vm513_vm1, %v3041_v39  ;;  %v3976_v39 = vld [vmem:[%s5421_s12 + $0x68] sm:$0xff] }
0x1229   :  { %4470 = vmatmul.mubr.msk.f32.vlgmr.msra.gmra.mxu1 %vm513_vm1, %v3042_v41  ;;  %v3975_v41 = vld [vmem:[%s5421_s12 + $0x60] sm:$0xff] }
0x122a   :  { %4473 = vmatpush3.msra.mxu1 %v3923_v40 }
0x122b   :  { %4474 = vmatprep.subr.mxu1 %v3922_v43 }
0x122c   :  { %4475 = vmatpush3.msra.mxu1 %v3922_v43  ;;  %v3974_v43 = vld [vmem:[%s5421_s12 + $0x58] sm:$0xff] }
0x122d   :  { %4486 = vmatprep.subr.mxu1 %v3048_v36 }
0x124c   :  { %v3307_v24 = vpop.xlane.xlu0 %3306 }
0x124d   :  { %v3309_v44 = vsub.f32 %v3301_v30, %v3307_v24  ;;  %v3508_v30 = vadd.f32 1.0, %v3958_v29  ;;  %v3973_v24 = vld [vmem:[%s5421_s12 + $0x50] sm:$0xff] }
0x124f   :  { %v3312_v46 = vmul.f32 1.442695, %v3309_v44  ;;  %v3513_v34 = vrot.slane %v3508_v30, %v4803_v28  ;;  %v3972_v44 = vld [vmem:[%s5421_s12 + $0x48] sm:$0xff] }
0x1250   :  { %v3316_v48 = vpop.xlane.xlu0 %3315 }
0x1251   :  { %4621 = vpow2.f32 %v3312_v46  ;;  %v3971_v46 = vld [vmem:[%s5421_s12 + $0x40] sm:$0xff] }
0x1252   :  { %4623 = vrcp.f32 %v3316_v48 }
0x125e   :  { %v4622_v3 = vpop.eup %4621 }
0x125f   :  { %v3317_v58 = vsel %vm513_vm1, %v4622_v3, 0.0  ;;  %v4624_v55 = vpop.eup %4623 }
0x1260   :  { %3318 = vadd.xlane.f32.xlu1 %v3317_v58  ;;  %v3322_v52 = vmul.f32 %v4624_v55, %v4616_v32 }
0x12e9   :  { %v4471_v42 = vpop.f32.mrf.mxu1  ;;  %v3319_v23 = vpop.xlane.xlu1 %3318 }
0x12ea   :  { %4625 = vrcp.f32 %v3319_v23 }
0x12eb   :  { %v3123_v50 = vpop.f32.mrf.mxu1 }
0x12ec   :  { %4476 = vmatprep.mubr.msk.f32.mxu1 %vm513_vm1, %v3123_v50 }
0x12ed   :  { %4477 = vmatmul.mubr.msk.f32.vlgmr.msra.gmra.mxu1 %vm513_vm1, %v4471_v42 }
0x12ee   :  { %4487 = vmatpush3.msra.mxu1 %v3048_v36  ;;  %4490 = vmatprep.mubr.msk.f32.mxu1 %vm513_vm1, %v3322_v52 }
0x12ef   :  { %4488 = vmatprep.subr.mxu1 %v3046_v22 }
0x12f0   :  { %4489 = vmatpush3.msra.mxu1 %v3046_v22 }
0x12f1   :  { %4493 = vmatprep.subr.mxu1 %v3925_v56 }
0x12f7   :  { %v4626_v54 = vpop.eup %4625 }
0x12f8   :  { %v3323_v59 = vmul.f32 %v4626_v54, %v4622_v3 }
0x12fa   :  { %4491 = vmatmul.mubr.msk.f32.vlgmr.msra.gmra.mxu1 %vm513_vm1, %v3323_v59 }
0x12fb   :  { %4494 = vmatpush3.msra.mxu1 %v3925_v56 }
0x12fc   :  { %4495 = vmatprep.subr.mxu1 %v3924_v62 }
0x12fd   :  { %4496 = vmatpush3.msra.mxu1 %v3924_v62 }
0x13ad   :  { %v4478_v0 = vpop.f32.mrf.mxu1 }
0x13ae   :  { %v3214_v53 = vadd.f32 %v4478_v0, %v2923_v63 }
0x13af   :  { %v3204_v1 = vpop.f32.mrf.mxu1 }
0x13b0   :  { %v3213_v4 = vadd.f32 %v3204_v1, %v2918_v61 }
0x13ba   :  { %v4492_v5 = vpop.f32.mrf.mxu1 }
0x13bc   :  { %v3396_v6 = vpop.f32.mrf.mxu1 }
0x13bd   :  { %4497 = vmatprep.mubr.msk.f32.mxu1 %vm513_vm1, %v3396_v6 }
0x13be   :  { %4498 = vmatmul.mubr.msk.f32.vlgmr.msra.gmra.mxu1 %vm513_vm1, %v4492_v5 }
0x147e   :  { %v4499_v7 = vpop.f32.mrf.mxu1 }
0x147f   :  { %v3487_v8 = vadd.f32 %v4499_v7, %v3214_v53 }
0x1480   :  { %v3477_v9 = vpop.f32.mrf.mxu1 }
0x1481   :  { %v5325_v10 = vadd.f32 %v3487_v8, %v5090_v2  ;;  %v3486_v11 = vadd.f32 %v3477_v9, %v3213_v4  ;;  %v3962_v2 = vld [vmem:[%s5419_s10 + $0x38] sm:$0xff] }
0x1482   :  { %4500 = vmatprep.subr.mxu0 %v3962_v2 }
0x1483   :  { %v5328_v57 = vadd.f32 %v3486_v11, %v5093_v47  ;;  %v3493_v60 = vmul.f32 %v5325_v10, %v5325_v10  ;;  %v3968_v47 = vld [vmem:[%s5420_s11 + $0x38] sm:$0xff]  ;;  %4501 = vmatpush3.msra.mxu0 %v3962_v2 }
0x1484   :  { %4511 = vmatprep.subr.mxu1 %v3968_v47  ;;  %4502 = vmatprep.subr.mxu0 %v3961_v17 }
0x1485   :  { %v3497_v12 = vsel %vm67_vm0, %v3493_v60, 0.0  ;;  %v3492_v14 = vmul.f32 %v5328_v57, %v5328_v57  ;;  %4512 = vmatpush3.msra.mxu1 %v3968_v47  ;;  %4503 = vmatpush3.msra.mxu0 %v3961_v17 }
0x1486   :  { %3498 = vadd.xlane.f32.xlu1 %v3497_v12  ;;  %4513 = vmatprep.subr.mxu1 %v3967_v18 }
0x1487   :  { %v3494_v15 = vsel %vm67_vm0, %v3492_v14, 0.0  ;;  %4514 = vmatpush3.msra.mxu1 %v3967_v18  ;;  %4504 = vmatprep.subr.mxu0 %v3960_v13 }
0x1488   :  { %3495 = vadd.xlane.f32.xlu0 %v3494_v15  ;;  %4515 = vmatprep.subr.mxu1 %v3966_v19 }
0x1489   :  { %4505 = vmatpush3.msra.mxu0 %v3960_v13  ;;  %4516 = vmatpush3.msra.mxu1 %v3966_v19 }
0x148a   :  { %4506 = vmatprep.subr.mxu0 %v3959_v16  ;;  %4517 = vmatprep.subr.mxu1 %v3965_v20 }
0x148b   :  { %4507 = vmatpush3.msra.mxu0 %v3959_v16  ;;  %4518 = vmatpush3.msra.mxu1 %v3965_v20 }
0x148c   :  { %4522 = vmatprep.subr.mxu0 %v3978_v37 }
0x150f   :  { %v3499_v21 = vpop.xlane.xlu1 %3498 }
0x1510   :  { %v3501_v45 = vmul.f32 0.03125, %v3499_v21 }
0x1511   :  { %v3496_v22 = vpop.xlane.xlu0 %3495 }
0x1512   :  { %v3503_v25 = vadd.f32 1e-06, %v3501_v45  ;;  %v3500_v26 = vmul.f32 0.03125, %v3496_v22 }
0x1514   :  { %4627 = vrsqrt.f32 %v3503_v25  ;;  %v3502_v27 = vadd.f32 1e-06, %v3500_v26 }
0x1516   :  { %4629 = vrsqrt.f32 %v3502_v27 }
0x1521   :  { %v4628_v31 = vpop.eup %4627 }
0x1522   :  { %v3507_v33 = vmul.f32 %v4628_v31, %v5325_v10 }
0x1523   :  { %v4630_v32 = vpop.eup %4629 }
0x1524   :  { %v3506_v35 = vmul.f32 %v4630_v32, %v5328_v57  ;;  %v3516_v40 = vmul.f32 %v3513_v34, %v3507_v33 }
0x1526   :  { %v3515_v36 = vmul.f32 %v3513_v34, %v3506_v35 }
0x1528   :  { %4508 = vmatprep.mubr.msk.f32.mxu0 %vm67_vm0, %v3515_v36  ;;  %4519 = vmatprep.mubr.msk.f32.mxu1 %vm67_vm0, %v3515_v36 }
0x1529   :  { %4509 = vmatmul.mubr.msk.f32.vlgmr.msra.gmra.mxu0 %vm67_vm0, %v3516_v40  ;;  %4520 = vmatmul.mubr.msk.f32.vlgmr.msra.gmra.mxu1 %vm67_vm0, %v3516_v40 }
0x152a   :  { %4523 = vmatpush3.msra.mxu0 %v3978_v37 }
0x152b   :  { %4524 = vmatprep.subr.mxu0 %v3977_v38 }
0x152c   :  { %4525 = vmatpush3.msra.mxu0 %v3977_v38 }
0x152d   :  { %4526 = vmatprep.subr.mxu0 %v3976_v39 }
0x152e   :  { %4527 = vmatpush3.msra.mxu0 %v3976_v39 }
0x152f   :  { %4528 = vmatprep.subr.mxu0 %v3975_v41 }
0x1530   :  { %4529 = vmatpush3.msra.mxu0 %v3975_v41 }
0x1531   :  { %4530 = vmatprep.subr.mxu0 %v3974_v43 }
0x1532   :  { %4531 = vmatpush3.msra.mxu0 %v3974_v43 }
0x1533   :  { %4532 = vmatprep.subr.mxu0 %v3973_v24 }
0x1534   :  { %4533 = vmatpush3.msra.mxu0 %v3973_v24 }
0x1535   :  { %4534 = vmatprep.subr.mxu0 %v3972_v44 }
0x1536   :  { %4535 = vmatpush3.msra.mxu0 %v3972_v44 }
0x1537   :  { %4536 = vmatprep.subr.mxu0 %v3971_v46 }
0x1538   :  { %4537 = vmatpush3.msra.mxu0 %v3971_v46 }
0x15e9   :  { %v4510_v3 = vpop.f32.mrf.mxu0  ;;  %v4521_v53 = vpop.f32.mrf.mxu1 }
0x15ea   :  { %v3684_v58 = vmul.f32 %v4510_v3, %v4510_v3 }
0x15eb   :  { %v3594_v48 = vpop.f32.mrf.mxu0  ;;  %v3674_v6 = vpop.f32.mrf.mxu1 }
0x15ec   :  { %v3686_v49 = vmul.f32 %v4510_v3, %v3684_v58  ;;  %v3683_v51 = vmul.f32 %v3594_v48, %v3594_v48 }
0x15ee   :  { %v3688_v55 = vmul.f32 0.044715, %v3686_v49  ;;  %v3685_v42 = vmul.f32 %v3683_v51, %v3594_v48 }
0x15f0   :  { %v3690_v23 = vadd.f32 %v4510_v3, %v3688_v55  ;;  %v3687_v50 = vmul.f32 0.044715, %v3685_v42 }
0x15f2   :  { %v3692_v52 = vmul.f32 0.7978846, %v3690_v23  ;;  %v3689_v54 = vadd.f32 %v3687_v50, %v3594_v48 }
0x15f4   :  { %4631 = vtanh.f32 %v3692_v52  ;;  %v3691_v59 = vmul.f32 0.7978846, %v3689_v54 }
0x15f6   :  { %4633 = vtanh.f32 %v3691_v59 }
0x1601   :  { %v4632_v56 = vpop.eup %4631 }
0x1602   :  { %v3696_v62 = vadd.f32 1.0, %v4632_v56 }
0x1603   :  { %v4634_v63 = vpop.eup %4633 }
0x1604   :  { %v3698_v0 = vmul.f32 0.5, %v3696_v62  ;;  %v3695_v61 = vadd.f32 1.0, %v4634_v63 }
0x1606   :  { %v3697_v1 = vmul.f32 0.5, %v3695_v61  ;;  %v3700_v4 = vmul.f32 %v4510_v3, %v3698_v0 }
0x1608   :  { %v3699_v5 = vmul.f32 %v3697_v1, %v3594_v48  ;;  %v3702_v8 = vmul.f32 %v4521_v53, %v3700_v4 }
0x160a   :  { %v3701_v7 = vmul.f32 %v3699_v5, %v3674_v6 }
0x160c   :  { %4538 = vmatprep.mubr.msk.f32.mxu0 %vm1842_vm2, %v3701_v7 }
0x160d   :  { %4539 = vmatmul.mubr.msk.f32.vlgmr.msra.gmra.mxu0 %vm1842_vm2, %v3702_v8 }
0x16cd   :  { %v4540_v9 = vpop.f32.mrf.mxu0 }
0x16ce   :  { %v3794_v11 = vadd.f32 %v4540_v9, %v5325_v10  ;;  %v3795_v10 = vld [vmem:[%s5424_s15] sm:$0x1] }
0x16cf   :  { %v3784_v60 = vpop.f32.mrf.mxu0 }
0x16d0   :  { %v3793_v12 = vadd.f32 %v3784_v60, %v5328_v57  ;;  %v3797_v14 = vmul.f32 %v3794_v11, %v3794_v11  ;;  %v3812_v57 = vadd.f32 1.0, %v3795_v10 }
0x16d2   :  { %v3801_v15 = vsel %vm67_vm0, %v3797_v14, 0.0  ;;  %v3796_v2 = vmul.f32 %v3793_v12, %v3793_v12  ;;  %v3817_v21 = vrot.slane %v3812_v57, %v4803_v28 }
0x16d3   :  { %3802 = vadd.xlane.f32.xlu1 %v3801_v15 }
0x16d4   :  { %v3798_v47 = vsel %vm67_vm0, %v3796_v2, 0.0 }
0x16d5   :  { %3799 = vadd.xlane.f32.xlu0 %v3798_v47 }
0x175c   :  { %v3803_v17 = vpop.xlane.xlu1 %3802 }
0x175d   :  { %v3805_v18 = vmul.f32 0.03125, %v3803_v17 }
0x175e   :  { %v3800_v13 = vpop.xlane.xlu0 %3799 }
0x175f   :  { %v3807_v19 = vadd.f32 1e-06, %v3805_v18  ;;  %v3804_v16 = vmul.f32 0.03125, %v3800_v13 }
0x1761   :  { %4635 = vrsqrt.f32 %v3807_v19  ;;  %v3806_v20 = vadd.f32 1e-06, %v3804_v16 }
0x1763   :  { %4637 = vrsqrt.f32 %v3806_v20 }
0x176e   :  { %v4636_v45 = vpop.eup %4635 }
0x176f   :  { %v3811_v22 = vmul.f32 %v4636_v45, %v3794_v11 }
0x1770   :  { %v4638_v25 = vpop.eup %4637 }
0x1771   :  { %v3810_v26 = vmul.f32 %v4638_v25, %v3793_v12  ;;  %v3820_v27 = vmul.f32 %v3817_v21, %v3811_v22 }
0x1773   :  { %v3819_v29 = vmul.f32 %v3817_v21, %v3810_v26  ;;  %3822 = vst.msk [vmem:[#allocation2 + $0x8] sm:$0xff] %vm67_vm0, %v3820_v27 }
0x1775   :  { %3821 = vst.msk [vmem:[#allocation2] sm:$0xff] %vm67_vm0, %v3819_v29 }
0x1776   :  { %4652 = shalt.err (!%p4649_p4)
}
0x1777   :  { %s4667_s15 = smov 128   ;;  %s4668_s23 = smov 8  }
0x1778   :  { %3834 = dma.vmem_to_hbm [thread:$0]  %s3829_s22, 256, %s5425_s16, [#allocation3], %s4667_s15, %s4667_s15, %s4668_s23  }
0x1779   :  { %4661 = dma.done.wait [#allocation3], 256  }
0x177a   :  { %4662 = vsyncadd [#allocation3], 4294967040 }
0x177b   :  { %3838 = vsyncpa [#allocation3], 1 }

</bundles_post_ra>
